<compile_context>
chip_gen: v6e
topology: v6e:2x2x1
jax: 0.10.0
libtpu: 0.0.40
codegen_flags: <defaults>
</compile_context>

<pallas_src>
import functools

import jax
import jax.numpy as jnp
from jax import lax
from jax.experimental import pallas as pl
from jax.experimental.pallas import tpu as pltpu


def generate_all_onehots(k=4, num_classes=4):
    """JAX port of boda.common.utils.generate_all_onehots -> (num_classes**k, num_classes, k)."""
    idx = jnp.arange(num_classes ** k, dtype=jnp.int32)
    powers = num_classes ** jnp.arange(k, dtype=jnp.int32)
    tokens = (idx[:, None] // powers[None, :]) % num_classes            # (4^k, k)
    onehots = jax.nn.one_hot(tokens, num_classes, dtype=jnp.float32)    # (4^k, k, C)
    return jnp.transpose(onehots, (0, 2, 1))                            # (4^k, C, k)


def _kmer_kernel(k, w_ref, x_ref, o_ref):
    # w_ref : (N, K*C)     bf16 flattened k-mer bank; constant block -> VMEM-resident
    # x_ref : (tb, K*C, Lt) bf16 wrapper-side im2col slab
    # o_ref : (tb, N, Lt)   0/1 mask (bf16 by default)
    tb = x_ref.shape[0]
    w = w_ref[...]                 # tiny (~8 KB) vreg load per step; block not re-DMA'd
    # Exact compare: inputs/weights are strictly 0/1, sums are small integers <= k,
    # accumulated in f32 -> acc == k iff the full k-mer matches (same as eq(k)).
    kf = jnp.float32(k)

    def body(b, carry):
        acc = jnp.dot(w, x_ref[b], preferred_element_type=jnp.float32)  # (N, Lt) on MXU
        o_ref[b] = (acc == kf).astype(o_ref.dtype)                      # lane-dense store
        return carry

    lax.fori_loop(0, tb, body, None, unroll=True)


def _largest_divisor_leq(n, cap):
    cap = int(max(1, min(n, cap)))
    for d in range(cap, 0, -1):
        if n % d == 0:
            return d
    return 1


def _num_tensorcores():
    """Best-effort TensorCore count of device 0 (v5e/v6e: 1, v7x: 2); falls back to 1."""
    try:
        dev = jax.devices()[0]
        for attr in ("num_cores", "core_count", "num_tensorcores"):
            v = getattr(dev, attr, None)
            if isinstance(v, int) and v > 0:
                return v
    except Exception:
        pass
    return 1


def kmer_filter(x, weight, *, out_dtype=jnp.bfloat16, max_block_batch=16,
                vmem_budget_bytes=16 << 20):
    """x: (B, C, L); weight: (N, C, k) one-hot k-mer bank.

    Returns (B, N, L-k+1) in out_dtype with values exactly 0.0 / 1.0 (matches
    F.conv1d(x, weight).eq(k); use out_dtype=jnp.float32 for PyTorch's exact dtype).
    """
    B, C, L = x.shape
    N, Cw, K = weight.shape
    assert Cw == C, "weight channel dim must match input channels"
    L_out = L - K + 1
    assert L_out >= 1, "sequence shorter than k"
    KC = K * C

    # --- wrapper-side prep (input side is ~N/C times smaller than output: negligible) ---
    xb = x.astype(jnp.bfloat16)
    # Flatten weight so w_flat[n, j*C + c] == weight[n, c, j] (matches im2col row order).
    w_flat = jnp.transpose(weight.astype(jnp.bfloat16), (0, 2, 1)).reshape(N, KC)
    # im2col: row (j*C + c) of x_unf[b] holds x[b, c, j : j + L_out].
    x_unf = jnp.concatenate([xb[:, :, j:j + L_out] for j in range(K)], axis=1)  # (B, KC, L_out)
    # Pad L_out to a multiple of 128 -> unmasked lane-dense output stores for any L.
    Lp = max(128, ((L_out + 127) // 128) * 128)
    if Lp != L_out:
        x_unf = jnp.pad(x_unf, ((0, 0), (0, 0), (0, Lp - L_out)))   # zero cols => acc < k => 0

    # --- generation-aware tile sizing (budget fits v5e/v6e/v7x scoped VMEM limits) ---
    in_item = 2
    out_item = jnp.dtype(out_dtype).itemsize
    m = Lp // 128
    # Double-buffered in+out bytes per (batch row, 128 output lanes).
    row_lane_bytes = 2 * 128 * (KC * in_item + N * out_item)
    d = _largest_divisor_leq(m, max(1, vmem_budget_bytes // row_lane_bytes))
    Lt = 128 * d
    tb_cap = max(1, vmem_budget_bytes // (row_lane_bytes * d))
    tb = _largest_divisor_leq(B, min(max_block_batch, tb_cap))
    # Keep >= 2 grid steps only when a 2nd TensorCore exists (v7x megacore sharding);
    # single-TC v5e/v6e use the full VMEM-derived tile (fewer per-step overheads).
    if _num_tensorcores() >= 2 and B >= 2 and (B // tb) * (m // d) < 2:
        tb = _largest_divisor_leq(B, max(1, B // 2))
    # TODO(synk): prime B falls back to tb=1; a cdiv grid with a masked last tile would fix it.
    grid = (B // tb, m // d)

    cost = pl.CostEstimate(
        flops=2 * B * N * KC * Lp,
        transcendentals=0,
        bytes_accessed=(B * KC * Lp + N * KC) * in_item + B * N * Lp * out_item,
    )

    out = pl.pallas_call(
        functools.partial(_kmer_kernel, K),
        out_shape=jax.ShapeDtypeStruct((B, N, Lp), out_dtype),
        grid_spec=pltpu.PrefetchScalarGridSpec(
            num_scalar_prefetch=0,
            grid=grid,
            in_specs=[
                # constant block index -> weight stays resident in VMEM across all steps
                pl.BlockSpec((N, KC), lambda i, j: (0, 0)),
                pl.BlockSpec((tb, KC, Lt), lambda i, j: (i, 0, j)),
            ],
            out_specs=pl.BlockSpec((tb, N, Lt), lambda i, j: (i, 0, j)),
        ),
        compiler_params=pltpu.CompilerParams(
            dimension_semantics=("parallel", "parallel"),
            vmem_limit_bytes=32 << 20,
        ),
        cost_estimate=cost,
    )(w_flat, x_unf)

    return out[:, :, :L_out] if Lp != L_out else out


if __name__ == "__main__":
    key = jax.random.PRNGKey(0)

    k = 4
    B, C, L = 8, 4, 131            # L_out = 128 (lane-aligned; padding path covers other L too)
    N = C ** k                     # 256 k-mers

    tokens = jax.random.randint(key, (B, L), 0, C)
    x = jnp.transpose(jax.nn.one_hot(tokens, C, dtype=jnp.float32), (0, 2, 1))  # (B, C, L)
    weight = generate_all_onehots(k, C)                                          # (N, C, k)

    out = jax.block_until_ready(kmer_filter(x, weight))

    # Reference: faithful F.conv1d(input, weight).eq(k).float()
    conv = jax.lax.conv_general_dilated(
        x, weight, window_strides=(1,), padding="VALID",
        dimension_numbers=("NCH", "OIH", "NCH"),
        precision=jax.lax.Precision.HIGHEST)
    ref = (conv == float(k)).astype(jnp.float32)

    assert out.shape == (B, N, L - k + 1)
    assert out.dtype == jnp.bfloat16
    assert jnp.array_equal(out.astype(jnp.float32), ref)
    # One-hot input => exactly one matching k-mer per position.
    assert jnp.array_equal(out.astype(jnp.float32).sum(axis=1),
                           jnp.ones((B, L - k + 1), jnp.float32))

    print("KERNEL_OK")
</pallas_src>

<mosaic_0001>
module attributes {stable_mosaic.version = 11 : i64} {
  func.func @_kmer_kernel(%arg0: i32, %arg1: i32, %arg2: memref<256x16xbf16, #tpu.memory_space<vmem>>, %arg3: memref<8x16x128xbf16, #tpu.memory_space<vmem>>, %arg4: memref<8x256x128xbf16, #tpu.memory_space<vmem>>) attributes {dimension_semantics = [#tpu.dimension_semantics<parallel>, #tpu.dimension_semantics<parallel>], iteration_bounds = array<i64: 1, 1>, scalar_prefetch = 0 : i64, scratch_operands = 0 : i64, tpu.core_type = #tpu.core_type<tc>, window_params = [{pipeline_mode = #tpu.pipeline_mode<synchronous>, transform_indices = @transform_0, window_bounds = array<i64: 256, 16>}, {transform_indices = @transform_1, window_bounds = array<i64: 8, 16, 128>}, {transform_indices = @transform_2, window_bounds = array<i64: 8, 256, 128>}]} {
    %c0 = arith.constant 0 : index
    %c0_0 = arith.constant 0 : index
    %0 = vector.load %arg2[%c0, %c0_0] : memref<256x16xbf16, #tpu.memory_space<vmem>>, vector<256x16xbf16>
    %cst = arith.constant 4.000000e+00 : f32
    %c0_i32 = arith.constant 0 : i32
    %1 = arith.index_cast %c0_i32 : i32 to index
    %c0_1 = arith.constant 0 : index
    %c0_2 = arith.constant 0 : index
    %2 = vector.load %arg3[%1, %c0_1, %c0_2] : memref<8x16x128xbf16, #tpu.memory_space<vmem>>, vector<1x16x128xbf16>
    %3 = vector.shape_cast %2 : vector<1x16x128xbf16> to vector<16x128xbf16>
    %cst_3 = arith.constant dense<0.000000e+00> : vector<256x128xf32>
    %4 = tpu.matmul %0, %3, %cst_3 {dimension_numbers = #tpu.dot_dimension_numbers<[1], [0], [0], [1], [0, 0, 1, 1], [], []>} : vector<256x16xbf16>, vector<16x128xbf16>, vector<256x128xf32> -> vector<256x128xf32>
    %5 = vector.broadcast %cst : f32 to vector<256x128xf32>
    %6 = arith.cmpf oeq, %4, %5 : vector<256x128xf32>
    %7 = arith.extui %6 : vector<256x128xi1> to vector<256x128xi32>
    %8 = arith.sitofp %7 : vector<256x128xi32> to vector<256x128xf32>
    %9 = arith.truncf %8 : vector<256x128xf32> to vector<256x128xbf16>
    %10 = arith.index_cast %c0_i32 : i32 to index
    %c0_4 = arith.constant 0 : index
    %c0_5 = arith.constant 0 : index
    %11 = vector.load %arg4[%10, %c0_4, %c0_5] : memref<8x256x128xbf16, #tpu.memory_space<vmem>>, vector<1x256x128xbf16>
    %12 = vector.shape_cast %11 : vector<1x256x128xbf16> to vector<256x128xbf16>
    %13 = vector.shape_cast %9 : vector<256x128xbf16> to vector<1x256x128xbf16>
    tpu.vector_store %arg4[%10, %c0_4, %c0_5], %13 {strides = array<i32>} : memref<8x256x128xbf16, #tpu.memory_space<vmem>>, vector<1x256x128xbf16>,
    %c1_i32 = arith.constant 1 : i32
    %14 = arith.index_cast %c1_i32 : i32 to index
    %c0_6 = arith.constant 0 : index
    %c0_7 = arith.constant 0 : index
    %15 = vector.load %arg3[%14, %c0_6, %c0_7] : memref<8x16x128xbf16, #tpu.memory_space<vmem>>, vector<1x16x128xbf16>
    %16 = vector.shape_cast %15 : vector<1x16x128xbf16> to vector<16x128xbf16>
    %cst_8 = arith.constant dense<0.000000e+00> : vector<256x128xf32>
    %17 = tpu.matmul %0, %16, %cst_8 {dimension_numbers = #tpu.dot_dimension_numbers<[1], [0], [0], [1], [0, 0, 1, 1], [], []>} : vector<256x16xbf16>, vector<16x128xbf16>, vector<256x128xf32> -> vector<256x128xf32>
    %18 = vector.broadcast %cst : f32 to vector<256x128xf32>
    %19 = arith.cmpf oeq, %17, %18 : vector<256x128xf32>
    %20 = arith.extui %19 : vector<256x128xi1> to vector<256x128xi32>
    %21 = arith.sitofp %20 : vector<256x128xi32> to vector<256x128xf32>
    %22 = arith.truncf %21 : vector<256x128xf32> to vector<256x128xbf16>
    %23 = arith.index_cast %c1_i32 : i32 to index
    %c0_9 = arith.constant 0 : index
    %c0_10 = arith.constant 0 : index
    %24 = vector.load %arg4[%23, %c0_9, %c0_10] : memref<8x256x128xbf16, #tpu.memory_space<vmem>>, vector<1x256x128xbf16>
    %25 = vector.shape_cast %24 : vector<1x256x128xbf16> to vector<256x128xbf16>
    %26 = vector.shape_cast %22 : vector<256x128xbf16> to vector<1x256x128xbf16>
    tpu.vector_store %arg4[%23, %c0_9, %c0_10], %26 {strides = array<i32>} : memref<8x256x128xbf16, #tpu.memory_space<vmem>>, vector<1x256x128xbf16>,
    %c2_i32 = arith.constant 2 : i32
    %27 = arith.index_cast %c2_i32 : i32 to index
    %c0_11 = arith.constant 0 : index
    %c0_12 = arith.constant 0 : index
    %28 = vector.load %arg3[%27, %c0_11, %c0_12] : memref<8x16x128xbf16, #tpu.memory_space<vmem>>, vector<1x16x128xbf16>
    %29 = vector.shape_cast %28 : vector<1x16x128xbf16> to vector<16x128xbf16>
    %cst_13 = arith.constant dense<0.000000e+00> : vector<256x128xf32>
    %30 = tpu.matmul %0, %29, %cst_13 {dimension_numbers = #tpu.dot_dimension_numbers<[1], [0], [0], [1], [0, 0, 1, 1], [], []>} : vector<256x16xbf16>, vector<16x128xbf16>, vector<256x128xf32> -> vector<256x128xf32>
    %31 = vector.broadcast %cst : f32 to vector<256x128xf32>
    %32 = arith.cmpf oeq, %30, %31 : vector<256x128xf32>
    %33 = arith.extui %32 : vector<256x128xi1> to vector<256x128xi32>
    %34 = arith.sitofp %33 : vector<256x128xi32> to vector<256x128xf32>
    %35 = arith.truncf %34 : vector<256x128xf32> to vector<256x128xbf16>
    %36 = arith.index_cast %c2_i32 : i32 to index
    %c0_14 = arith.constant 0 : index
    %c0_15 = arith.constant 0 : index
    %37 = vector.load %arg4[%36, %c0_14, %c0_15] : memref<8x256x128xbf16, #tpu.memory_space<vmem>>, vector<1x256x128xbf16>
    %38 = vector.shape_cast %37 : vector<1x256x128xbf16> to vector<256x128xbf16>
    %39 = vector.shape_cast %35 : vector<256x128xbf16> to vector<1x256x128xbf16>
    tpu.vector_store %arg4[%36, %c0_14, %c0_15], %39 {strides = array<i32>} : memref<8x256x128xbf16, #tpu.memory_space<vmem>>, vector<1x256x128xbf16>,
    %c3_i32 = arith.constant 3 : i32
    %40 = arith.index_cast %c3_i32 : i32 to index
    %c0_16 = arith.constant 0 : index
    %c0_17 = arith.constant 0 : index
    %41 = vector.load %arg3[%40, %c0_16, %c0_17] : memref<8x16x128xbf16, #tpu.memory_space<vmem>>, vector<1x16x128xbf16>
    %42 = vector.shape_cast %41 : vector<1x16x128xbf16> to vector<16x128xbf16>
    %cst_18 = arith.constant dense<0.000000e+00> : vector<256x128xf32>
    %43 = tpu.matmul %0, %42, %cst_18 {dimension_numbers = #tpu.dot_dimension_numbers<[1], [0], [0], [1], [0, 0, 1, 1], [], []>} : vector<256x16xbf16>, vector<16x128xbf16>, vector<256x128xf32> -> vector<256x128xf32>
    %44 = vector.broadcast %cst : f32 to vector<256x128xf32>
    %45 = arith.cmpf oeq, %43, %44 : vector<256x128xf32>
    %46 = arith.extui %45 : vector<256x128xi1> to vector<256x128xi32>
    %47 = arith.sitofp %46 : vector<256x128xi32> to vector<256x128xf32>
    %48 = arith.truncf %47 : vector<256x128xf32> to vector<256x128xbf16>
    %49 = arith.index_cast %c3_i32 : i32 to index
    %c0_19 = arith.constant 0 : index
    %c0_20 = arith.constant 0 : index
    %50 = vector.load %arg4[%49, %c0_19, %c0_20] : memref<8x256x128xbf16, #tpu.memory_space<vmem>>, vector<1x256x128xbf16>
    %51 = vector.shape_cast %50 : vector<1x256x128xbf16> to vector<256x128xbf16>
    %52 = vector.shape_cast %48 : vector<256x128xbf16> to vector<1x256x128xbf16>
    tpu.vector_store %arg4[%49, %c0_19, %c0_20], %52 {strides = array<i32>} : memref<8x256x128xbf16, #tpu.memory_space<vmem>>, vector<1x256x128xbf16>,
    %c4_i32 = arith.constant 4 : i32
    %53 = arith.index_cast %c4_i32 : i32 to index
    %c0_21 = arith.constant 0 : index
    %c0_22 = arith.constant 0 : index
    %54 = vector.load %arg3[%53, %c0_21, %c0_22] : memref<8x16x128xbf16, #tpu.memory_space<vmem>>, vector<1x16x128xbf16>
    %55 = vector.shape_cast %54 : vector<1x16x128xbf16> to vector<16x128xbf16>
    %cst_23 = arith.constant dense<0.000000e+00> : vector<256x128xf32>
    %56 = tpu.matmul %0, %55, %cst_23 {dimension_numbers = #tpu.dot_dimension_numbers<[1], [0], [0], [1], [0, 0, 1, 1], [], []>} : vector<256x16xbf16>, vector<16x128xbf16>, vector<256x128xf32> -> vector<256x128xf32>
    %57 = vector.broadcast %cst : f32 to vector<256x128xf32>
    %58 = arith.cmpf oeq, %56, %57 : vector<256x128xf32>
    %59 = arith.extui %58 : vector<256x128xi1> to vector<256x128xi32>
    %60 = arith.sitofp %59 : vector<256x128xi32> to vector<256x128xf32>
    %61 = arith.truncf %60 : vector<256x128xf32> to vector<256x128xbf16>
    %62 = arith.index_cast %c4_i32 : i32 to index
    %c0_24 = arith.constant 0 : index
    %c0_25 = arith.constant 0 : index
    %63 = vector.load %arg4[%62, %c0_24, %c0_25] : memref<8x256x128xbf16, #tpu.memory_space<vmem>>, vector<1x256x128xbf16>
    %64 = vector.shape_cast %63 : vector<1x256x128xbf16> to vector<256x128xbf16>
    %65 = vector.shape_cast %61 : vector<256x128xbf16> to vector<1x256x128xbf16>
    tpu.vector_store %arg4[%62, %c0_24, %c0_25], %65 {strides = array<i32>} : memref<8x256x128xbf16, #tpu.memory_space<vmem>>, vector<1x256x128xbf16>,
    %c5_i32 = arith.constant 5 : i32
    %66 = arith.index_cast %c5_i32 : i32 to index
    %c0_26 = arith.constant 0 : index
    %c0_27 = arith.constant 0 : index
    %67 = vector.load %arg3[%66, %c0_26, %c0_27] : memref<8x16x128xbf16, #tpu.memory_space<vmem>>, vector<1x16x128xbf16>
    %68 = vector.shape_cast %67 : vector<1x16x128xbf16> to vector<16x128xbf16>
    %cst_28 = arith.constant dense<0.000000e+00> : vector<256x128xf32>
    %69 = tpu.matmul %0, %68, %cst_28 {dimension_numbers = #tpu.dot_dimension_numbers<[1], [0], [0], [1], [0, 0, 1, 1], [], []>} : vector<256x16xbf16>, vector<16x128xbf16>, vector<256x128xf32> -> vector<256x128xf32>
    %70 = vector.broadcast %cst : f32 to vector<256x128xf32>
    %71 = arith.cmpf oeq, %69, %70 : vector<256x128xf32>
    %72 = arith.extui %71 : vector<256x128xi1> to vector<256x128xi32>
    %73 = arith.sitofp %72 : vector<256x128xi32> to vector<256x128xf32>
    %74 = arith.truncf %73 : vector<256x128xf32> to vector<256x128xbf16>
    %75 = arith.index_cast %c5_i32 : i32 to index
    %c0_29 = arith.constant 0 : index
    %c0_30 = arith.constant 0 : index
    %76 = vector.load %arg4[%75, %c0_29, %c0_30] : memref<8x256x128xbf16, #tpu.memory_space<vmem>>, vector<1x256x128xbf16>
    %77 = vector.shape_cast %76 : vector<1x256x128xbf16> to vector<256x128xbf16>
    %78 = vector.shape_cast %74 : vector<256x128xbf16> to vector<1x256x128xbf16>
    tpu.vector_store %arg4[%75, %c0_29, %c0_30], %78 {strides = array<i32>} : memref<8x256x128xbf16, #tpu.memory_space<vmem>>, vector<1x256x128xbf16>,
    %c6_i32 = arith.constant 6 : i32
    %79 = arith.index_cast %c6_i32 : i32 to index
    %c0_31 = arith.constant 0 : index
    %c0_32 = arith.constant 0 : index
    %80 = vector.load %arg3[%79, %c0_31, %c0_32] : memref<8x16x128xbf16, #tpu.memory_space<vmem>>, vector<1x16x128xbf16>
    %81 = vector.shape_cast %80 : vector<1x16x128xbf16> to vector<16x128xbf16>
    %cst_33 = arith.constant dense<0.000000e+00> : vector<256x128xf32>
    %82 = tpu.matmul %0, %81, %cst_33 {dimension_numbers = #tpu.dot_dimension_numbers<[1], [0], [0], [1], [0, 0, 1, 1], [], []>} : vector<256x16xbf16>, vector<16x128xbf16>, vector<256x128xf32> -> vector<256x128xf32>
    %83 = vector.broadcast %cst : f32 to vector<256x128xf32>
    %84 = arith.cmpf oeq, %82, %83 : vector<256x128xf32>
    %85 = arith.extui %84 : vector<256x128xi1> to vector<256x128xi32>
    %86 = arith.sitofp %85 : vector<256x128xi32> to vector<256x128xf32>
    %87 = arith.truncf %86 : vector<256x128xf32> to vector<256x128xbf16>
    %88 = arith.index_cast %c6_i32 : i32 to index
    %c0_34 = arith.constant 0 : index
    %c0_35 = arith.constant 0 : index
    %89 = vector.load %arg4[%88, %c0_34, %c0_35] : memref<8x256x128xbf16, #tpu.memory_space<vmem>>, vector<1x256x128xbf16>
    %90 = vector.shape_cast %89 : vector<1x256x128xbf16> to vector<256x128xbf16>
    %91 = vector.shape_cast %87 : vector<256x128xbf16> to vector<1x256x128xbf16>
    tpu.vector_store %arg4[%88, %c0_34, %c0_35], %91 {strides = array<i32>} : memref<8x256x128xbf16, #tpu.memory_space<vmem>>, vector<1x256x128xbf16>,
    %c7_i32 = arith.constant 7 : i32
    %92 = arith.index_cast %c7_i32 : i32 to index
    %c0_36 = arith.constant 0 : index
    %c0_37 = arith.constant 0 : index
    %93 = vector.load %arg3[%92, %c0_36, %c0_37] : memref<8x16x128xbf16, #tpu.memory_space<vmem>>, vector<1x16x128xbf16>
    %94 = vector.shape_cast %93 : vector<1x16x128xbf16> to vector<16x128xbf16>
    %cst_38 = arith.constant dense<0.000000e+00> : vector<256x128xf32>
    %95 = tpu.matmul %0, %94, %cst_38 {dimension_numbers = #tpu.dot_dimension_numbers<[1], [0], [0], [1], [0, 0, 1, 1], [], []>} : vector<256x16xbf16>, vector<16x128xbf16>, vector<256x128xf32> -> vector<256x128xf32>
    %96 = vector.broadcast %cst : f32 to vector<256x128xf32>
    %97 = arith.cmpf oeq, %95, %96 : vector<256x128xf32>
    %98 = arith.extui %97 : vector<256x128xi1> to vector<256x128xi32>
    %99 = arith.sitofp %98 : vector<256x128xi32> to vector<256x128xf32>
    %100 = arith.truncf %99 : vector<256x128xf32> to vector<256x128xbf16>
    %101 = arith.index_cast %c7_i32 : i32 to index
    %c0_39 = arith.constant 0 : index
    %c0_40 = arith.constant 0 : index
    %102 = vector.load %arg4[%101, %c0_39, %c0_40] : memref<8x256x128xbf16, #tpu.memory_space<vmem>>, vector<1x256x128xbf16>
    %103 = vector.shape_cast %102 : vector<1x256x128xbf16> to vector<256x128xbf16>
    %104 = vector.shape_cast %100 : vector<256x128xbf16> to vector<1x256x128xbf16>
    tpu.vector_store %arg4[%101, %c0_39, %c0_40], %104 {strides = array<i32>} : memref<8x256x128xbf16, #tpu.memory_space<vmem>>, vector<1x256x128xbf16>,
    %c8_i32 = arith.constant 8 : i32
    return
  }
  func.func @transform_0(%arg0: i32, %arg1: i32) -> (i32, i32) {
    %c0_i32 = arith.constant 0 : i32
    %c0_i32_0 = arith.constant 0 : i32
    %c0_i32_1 = arith.constant 0 : i32
    return %c0_i32, %c0_i32_0 : i32, i32
  }
  func.func @transform_1(%arg0: i32, %arg1: i32) -> (i32, i32, i32) {
    %c0_i32 = arith.constant 0 : i32
    %c0_i32_0 = arith.constant 0 : i32
    return %arg0, %c0_i32, %arg1 : i32, i32, i32
  }
  func.func @transform_2(%arg0: i32, %arg1: i32) -> (i32, i32, i32) {
    %c0_i32 = arith.constant 0 : i32
    %c0_i32_0 = arith.constant 0 : i32
    return %arg0, %c0_i32, %arg1 : i32, i32, i32
  }
}

</mosaic_0001>

<bundles_post_ra>
// kernel: tpu_custom_call.1
= control target key start
LH: loop header
LB: loop body
LE: loop exit
PB: predicated region body
PF: predicated region fallthrough
CT: control target
= control target key end

     0   :  { %vm133_vm0 = vcmask 130048   ;;  %s6138_s0 = inlined_call_operand.vmem [shape: bf16[256,16], index: 0, kind: input, shape index: {}]   ;;  %s6139_s1 = inlined_call_operand.vmem [shape: bf16[8,16,128], index: 1, kind: input, shape index: {}]   ;;  %s6140_s2 = inlined_call_operand.hbm [shape: bf16[8,256,128], index: 2, kind: output, shape index: {}]  }
   0x1   :  { %v5454_v0 = vld [vmem:[%s6139_s1] sm:$0xff]   ;;  %v5455_v1 = vld [vmem:[%s6139_s1 + $0x8] sm:$0xff]   ;;  %v5458_v4 = vld [vmem:[%s6139_s1 + $0x10] sm:$0xff]  }
   0x2   :  { %5178 = vmatprep.subr.bf16.mxu0 %v5454_v0  ;;  %v5528_v2 = vld [vmem:[%s6138_s0] sm:$0xff]   ;;  %5212 = vmatprep.subr.bf16.mxu1 %v5455_v1  ;;  %v5533_v3 = vld [vmem:[%s6138_s0 + $0x8] sm:$0xff]   ;;  %v5459_v5 = vld [vmem:[%s6139_s1 + $0x18] sm:$0xff]  }
   0x3   :  { %5179 = vmatpush3.bf16.msra.mxu0 %v5454_v0  ;;  %5213 = vmatpush3.bf16.msra.mxu1 %v5455_v1  ;;  %v5550_v6 = vld [vmem:[%s6138_s0 + $0x10] sm:$0xff]   ;;  %v5561_v7 = vld [vmem:[%s6138_s0 + $0x18] sm:$0xff]   ;;  %v5566_v8 = vld [vmem:[%s6138_s0 + $0x20] sm:$0xff]  }
   0x4   :  { %5180 = vmatprep.mubr.msk.bf16.mxu0 %vm133_vm0, %v5528_v2  ;;  %5214 = vmatprep.mubr.msk.bf16.mxu1 %vm133_vm0, %v5528_v2  ;;  %v5579_v9 = vld [vmem:[%s6138_s0 + $0x28] sm:$0xff]   ;;  %v5584_v10 = vld [vmem:[%s6138_s0 + $0x30] sm:$0xff]   ;;  %v5474_v11 = vld [vmem:[%s6139_s1 + $0x20] sm:$0xff]  }
   0x5   :  { %5246 = vmatprep.subr.bf16.mxu0 %v5458_v4  ;;  %5280 = vmatprep.subr.bf16.mxu1 %v5459_v5  ;;  %v5475_v12 = vld [vmem:[%s6139_s1 + $0x28] sm:$0xff]  }
   0x6   :  { %5181 = vmatmul.mubr.msk.bf16.vlgmr.msra.gmra.mxu0 %vm133_vm0, %v5533_v3  ;;  %5215 = vmatmul.mubr.msk.bf16.vlgmr.msra.gmra.mxu1 %vm133_vm0, %v5533_v3 }
   0x7   :  { %5247 = vmatpush3.bf16.msra.mxu0 %v5458_v4  ;;  %5281 = vmatpush3.bf16.msra.mxu1 %v5459_v5 }
   0x8   :  { %5184 = vmatprep.mubr.msk.bf16.mxu0 %vm133_vm0, %v5550_v6  ;;  %5218 = vmatprep.mubr.msk.bf16.mxu1 %vm133_vm0, %v5550_v6 }
   0x9   :  { %5314 = vmatprep.subr.bf16.mxu0 %v5474_v11  ;;  %5348 = vmatprep.subr.bf16.mxu1 %v5475_v12 }
   0xe   :  { %5185 = vmatmul.mubr.msk.bf16.gmra.mxu0 %vm133_vm0, %v5561_v7  ;;  %5219 = vmatmul.mubr.msk.bf16.gmra.mxu1 %vm133_vm0, %v5561_v7 }
   0xf   :  { %5188 = vmatprep.mubr.msk.bf16.mxu0 %vm133_vm0, %v5566_v8  ;;  %5222 = vmatprep.mubr.msk.bf16.mxu1 %vm133_vm0, %v5566_v8 }
  0x16   :  { %5189 = vmatmul.mubr.msk.bf16.gmra.mxu0 %vm133_vm0, %v5579_v9  ;;  %5223 = vmatmul.mubr.msk.bf16.gmra.mxu1 %vm133_vm0, %v5579_v9 }
  0x17   :  { %5192 = vmatprep.mubr.msk.bf16.mxu0 %vm133_vm0, %v5584_v10  ;;  %5226 = vmatprep.mubr.msk.bf16.mxu1 %vm133_vm0, %v5584_v10 }
  0x18   :  { %7 = vsyncpa [#allocation3], 0  ;;  %v5603_v13 = vld [vmem:[%s6138_s0 + $0x38] sm:$0xff]   ;;  %v5608_v14 = vld [vmem:[%s6138_s0 + $0x40] sm:$0xff]   ;;  %v5500_v30 = vmov 0.0  }
  0x19   :  { %v5621_v15 = vld [vmem:[%s6138_s0 + $0x48] sm:$0xff]   ;;  %v5626_v16 = vld [vmem:[%s6138_s0 + $0x50] sm:$0xff]   ;;  %v5639_v17 = vld [vmem:[%s6138_s0 + $0x58] sm:$0xff]  }
  0x1a   :  { %v5644_v18 = vld [vmem:[%s6138_s0 + $0x60] sm:$0xff]   ;;  %v5657_v19 = vld [vmem:[%s6138_s0 + $0x68] sm:$0xff]   ;;  %v5662_v20 = vld [vmem:[%s6138_s0 + $0x70] sm:$0xff]  }
  0x1b   :  { %v5675_v21 = vld [vmem:[%s6138_s0 + $0x78] sm:$0xff]   ;;  %v5476_v22 = vld [vmem:[%s6139_s1 + $0x30] sm:$0xff]  }
  0x1c   :  { %v5477_v23 = vld [vmem:[%s6139_s1 + $0x38] sm:$0xff]   ;;  %s5501_s1 = smov [#allocation2]  }
  0x1d   :  { %s3593_s28 = sshll.u32 %s5501_s1, 4  ;;  %s3594_s28 = int_to_ptr.vmem [resolvable:$true] %s3593_s28 }
  0x1e   :  { %5193 = vmatmul.mubr.msk.bf16.gmra.mxu0 %vm133_vm0, %v5603_v13  ;;  %5227 = vmatmul.mubr.msk.bf16.gmra.mxu1 %vm133_vm0, %v5603_v13  ;;  %s5478_s29 = scalar_lea.vmem %s3594_s28, 16384  ;;  %p5483_p1 = scmp.lt.s32.totalorder %s3594_s28, %s3594_s28 }
  0x1f   :  { %5196 = vmatprep.mubr.msk.bf16.mxu0 %vm133_vm0, %v5608_v14  ;;  %5230 = vmatprep.mubr.msk.bf16.mxu1 %vm133_vm0, %v5608_v14  ;;  %p5479_p0 = scmp.ne.s32.totalorder %s3594_s28, %s5478_s29  ;;  %p5484_p2 = scmp.lt.s32.totalorder %s5478_s29, %s5478_s29 }
  0x21   :  { %p5485_p3 = por %p5484_p2, %p5483_p1 }
  0x23   :  { %p5486_p4 = pnand %p5485_p3, %p5479_p0 }
  0x26   :  { %5197 = vmatmul.mubr.msk.bf16.gmra.mxu0 %vm133_vm0, %v5621_v15  ;;  %5231 = vmatmul.mubr.msk.bf16.gmra.mxu1 %vm133_vm0, %v5621_v15 }
  0x27   :  { %5200 = vmatprep.mubr.msk.bf16.mxu0 %vm133_vm0, %v5626_v16  ;;  %5234 = vmatprep.mubr.msk.bf16.mxu1 %vm133_vm0, %v5626_v16 }
  0x2e   :  { %5201 = vmatmul.mubr.msk.bf16.gmra.mxu0 %vm133_vm0, %v5639_v17  ;;  %5235 = vmatmul.mubr.msk.bf16.gmra.mxu1 %vm133_vm0, %v5639_v17 }
  0x2f   :  { %5204 = vmatprep.mubr.msk.bf16.mxu0 %vm133_vm0, %v5644_v18  ;;  %5238 = vmatprep.mubr.msk.bf16.mxu1 %vm133_vm0, %v5644_v18 }
  0x36   :  { %5205 = vmatmul.mubr.msk.bf16.gmra.mxu0 %vm133_vm0, %v5657_v19  ;;  %5239 = vmatmul.mubr.msk.bf16.gmra.mxu1 %vm133_vm0, %v5657_v19 }
  0x37   :  { %5208 = vmatprep.mubr.msk.bf16.mxu0 %vm133_vm0, %v5662_v20  ;;  %5242 = vmatprep.mubr.msk.bf16.mxu1 %vm133_vm0, %v5662_v20 }
  0x3e   :  { %5209 = vmatmul.mubr.msk.bf16.gmra.mxu0 %vm133_vm0, %v5675_v21  ;;  %5243 = vmatmul.mubr.msk.bf16.gmra.mxu1 %vm133_vm0, %v5675_v21 }
  0x3f   :  { %5248 = vmatprep.mubr.msk.bf16.mxu0 %vm133_vm0, %v5528_v2  ;;  %5282 = vmatprep.mubr.msk.bf16.mxu1 %vm133_vm0, %v5528_v2 }
  0x46   :  { %5249 = vmatmul.mubr.msk.bf16.vlgmr.msra.gmra.mxu0 %vm133_vm0, %v5533_v3  ;;  %5283 = vmatmul.mubr.msk.bf16.vlgmr.msra.gmra.mxu1 %vm133_vm0, %v5533_v3 }
  0x47   :  { %5315 = vmatpush3.bf16.msra.mxu0 %v5474_v11  ;;  %5349 = vmatpush3.bf16.msra.mxu1 %v5475_v12 }
  0x48   :  { %5252 = vmatprep.mubr.msk.bf16.mxu0 %vm133_vm0, %v5550_v6  ;;  %5286 = vmatprep.mubr.msk.bf16.mxu1 %vm133_vm0, %v5550_v6 }
  0x49   :  { %5382 = vmatprep.subr.bf16.mxu0 %v5476_v22  ;;  %5416 = vmatprep.subr.bf16.mxu1 %v5477_v23 }
  0x4e   :  { %5253 = vmatmul.mubr.msk.bf16.gmra.mxu0 %vm133_vm0, %v5561_v7  ;;  %5287 = vmatmul.mubr.msk.bf16.gmra.mxu1 %vm133_vm0, %v5561_v7 }
  0x4f   :  { %5256 = vmatprep.mubr.msk.bf16.mxu0 %vm133_vm0, %v5566_v8  ;;  %5290 = vmatprep.mubr.msk.bf16.mxu1 %vm133_vm0, %v5566_v8 }
  0x56   :  { %5257 = vmatmul.mubr.msk.bf16.gmra.mxu0 %vm133_vm0, %v5579_v9  ;;  %5291 = vmatmul.mubr.msk.bf16.gmra.mxu1 %vm133_vm0, %v5579_v9 }
  0x57   :  { %5260 = vmatprep.mubr.msk.bf16.mxu0 %vm133_vm0, %v5584_v10  ;;  %5294 = vmatprep.mubr.msk.bf16.mxu1 %vm133_vm0, %v5584_v10 }
  0x5e   :  { %5261 = vmatmul.mubr.msk.bf16.gmra.mxu0 %vm133_vm0, %v5603_v13  ;;  %5295 = vmatmul.mubr.msk.bf16.gmra.mxu1 %vm133_vm0, %v5603_v13 }
  0x5f   :  { %5264 = vmatprep.mubr.msk.bf16.mxu0 %vm133_vm0, %v5608_v14  ;;  %5298 = vmatprep.mubr.msk.bf16.mxu1 %vm133_vm0, %v5608_v14 }
  0x66   :  { %5265 = vmatmul.mubr.msk.bf16.gmra.mxu0 %vm133_vm0, %v5621_v15  ;;  %5299 = vmatmul.mubr.msk.bf16.gmra.mxu1 %vm133_vm0, %v5621_v15 }
  0x67   :  { %5268 = vmatprep.mubr.msk.bf16.mxu0 %vm133_vm0, %v5626_v16  ;;  %5302 = vmatprep.mubr.msk.bf16.mxu1 %vm133_vm0, %v5626_v16 }
  0x6e   :  { %5269 = vmatmul.mubr.msk.bf16.gmra.mxu0 %vm133_vm0, %v5639_v17  ;;  %5303 = vmatmul.mubr.msk.bf16.gmra.mxu1 %vm133_vm0, %v5639_v17 }
  0x6f   :  { %5272 = vmatprep.mubr.msk.bf16.mxu0 %vm133_vm0, %v5644_v18  ;;  %5306 = vmatprep.mubr.msk.bf16.mxu1 %vm133_vm0, %v5644_v18 }
  0x76   :  { %5273 = vmatmul.mubr.msk.bf16.gmra.mxu0 %vm133_vm0, %v5657_v19  ;;  %5307 = vmatmul.mubr.msk.bf16.gmra.mxu1 %vm133_vm0, %v5657_v19 }
  0x77   :  { %5276 = vmatprep.mubr.msk.bf16.mxu0 %vm133_vm0, %v5662_v20  ;;  %5310 = vmatprep.mubr.msk.bf16.mxu1 %vm133_vm0, %v5662_v20 }
  0x7e   :  { %5277 = vmatmul.mubr.msk.bf16.gmra.mxu0 %vm133_vm0, %v5675_v21  ;;  %5311 = vmatmul.mubr.msk.bf16.gmra.mxu1 %vm133_vm0, %v5675_v21 }
  0x7f   :  { %5316 = vmatprep.mubr.msk.bf16.mxu0 %vm133_vm0, %v5528_v2  ;;  %5350 = vmatprep.mubr.msk.bf16.mxu1 %vm133_vm0, %v5528_v2 }
  0x86   :  { %5317 = vmatmul.mubr.msk.bf16.vlgmr.msra.gmra.mxu0 %vm133_vm0, %v5533_v3  ;;  %5351 = vmatmul.mubr.msk.bf16.vlgmr.msra.gmra.mxu1 %vm133_vm0, %v5533_v3 }
  0x87   :  { %5383 = vmatpush3.bf16.msra.mxu0 %v5476_v22  ;;  %5417 = vmatpush3.bf16.msra.mxu1 %v5477_v23 }
  0x88   :  { %5320 = vmatprep.mubr.msk.bf16.mxu0 %vm133_vm0, %v5550_v6  ;;  %5354 = vmatprep.mubr.msk.bf16.mxu1 %vm133_vm0, %v5550_v6 }
  0x8e   :  { %5321 = vmatmul.mubr.msk.bf16.gmra.mxu0 %vm133_vm0, %v5561_v7  ;;  %5355 = vmatmul.mubr.msk.bf16.gmra.mxu1 %vm133_vm0, %v5561_v7 }
  0x8f   :  { %5324 = vmatprep.mubr.msk.bf16.mxu0 %vm133_vm0, %v5566_v8  ;;  %5358 = vmatprep.mubr.msk.bf16.mxu1 %vm133_vm0, %v5566_v8 }
  0x96   :  { %5325 = vmatmul.mubr.msk.bf16.gmra.mxu0 %vm133_vm0, %v5579_v9  ;;  %5359 = vmatmul.mubr.msk.bf16.gmra.mxu1 %vm133_vm0, %v5579_v9 }
  0x97   :  { %5328 = vmatprep.mubr.msk.bf16.mxu0 %vm133_vm0, %v5584_v10  ;;  %5362 = vmatprep.mubr.msk.bf16.mxu1 %vm133_vm0, %v5584_v10 }
  0x9e   :  { %5329 = vmatmul.mubr.msk.bf16.gmra.mxu0 %vm133_vm0, %v5603_v13  ;;  %5363 = vmatmul.mubr.msk.bf16.gmra.mxu1 %vm133_vm0, %v5603_v13 }
  0x9f   :  { %5332 = vmatprep.mubr.msk.bf16.mxu0 %vm133_vm0, %v5608_v14  ;;  %5366 = vmatprep.mubr.msk.bf16.mxu1 %vm133_vm0, %v5608_v14 }
  0xa6   :  { %5333 = vmatmul.mubr.msk.bf16.gmra.mxu0 %vm133_vm0, %v5621_v15  ;;  %5367 = vmatmul.mubr.msk.bf16.gmra.mxu1 %vm133_vm0, %v5621_v15 }
  0xa7   :  { %5336 = vmatprep.mubr.msk.bf16.mxu0 %vm133_vm0, %v5626_v16  ;;  %5370 = vmatprep.mubr.msk.bf16.mxu1 %vm133_vm0, %v5626_v16 }
  0xae   :  { %5337 = vmatmul.mubr.msk.bf16.gmra.mxu0 %vm133_vm0, %v5639_v17  ;;  %5371 = vmatmul.mubr.msk.bf16.gmra.mxu1 %vm133_vm0, %v5639_v17 }
  0xaf   :  { %5340 = vmatprep.mubr.msk.bf16.mxu0 %vm133_vm0, %v5644_v18  ;;  %5374 = vmatprep.mubr.msk.bf16.mxu1 %vm133_vm0, %v5644_v18 }
  0xb6   :  { %5341 = vmatmul.mubr.msk.bf16.gmra.mxu0 %vm133_vm0, %v5657_v19  ;;  %5375 = vmatmul.mubr.msk.bf16.gmra.mxu1 %vm133_vm0, %v5657_v19 }
  0xb7   :  { %5344 = vmatprep.mubr.msk.bf16.mxu0 %vm133_vm0, %v5662_v20  ;;  %5378 = vmatprep.mubr.msk.bf16.mxu1 %vm133_vm0, %v5662_v20 }
  0xbe   :  { %5345 = vmatmul.mubr.msk.bf16.gmra.mxu0 %vm133_vm0, %v5675_v21  ;;  %5379 = vmatmul.mubr.msk.bf16.gmra.mxu1 %vm133_vm0, %v5675_v21 }
  0xbf   :  { %5384 = vmatprep.mubr.msk.bf16.mxu0 %vm133_vm0, %v5528_v2  ;;  %5418 = vmatprep.mubr.msk.bf16.mxu1 %vm133_vm0, %v5528_v2 }
  0xc6   :  { %v5182_v24 = vpop.f32.mrf.mxu0  ;;  %5385 = vmatmul.mubr.msk.bf16.vlgmr.msra.gmra.mxu0 %vm133_vm0, %v5533_v3  ;;  %v5216_v25 = vpop.f32.mrf.mxu1  ;;  %5419 = vmatmul.mubr.msk.bf16.vlgmr.msra.gmra.mxu1 %vm133_vm0, %v5533_v3 }
  0xc7   :  { %5388 = vmatprep.mubr.msk.bf16.mxu0 %vm133_vm0, %v5550_v6  ;;  %5422 = vmatprep.mubr.msk.bf16.mxu1 %vm133_vm0, %v5550_v6  ;;  %vm345_vm1 = vcmp.eq.f32.partialorder %v5182_v24, 4.0  ;;  %vm771_vm2 = vcmp.eq.f32.partialorder %v5216_v25, 4.0 }
  0xc8   :  { %v216_v26 = vpop.f32.mrf.mxu0  ;;  %v642_v27 = vpop.f32.mrf.mxu1  ;;  %v3639_v31 = vsel %vm345_vm1, 1.0, %v5500_v30  ;;  %v3722_v34 = vsel %vm771_vm2, 1.0, %v5500_v30 }
  0xc9   :  { %vm343_vm3 = vcmp.eq.f32.partialorder %v216_v26, 4.0  ;;  %vm769_vm5 = vcmp.eq.f32.partialorder %v642_v27, 4.0 }
  0xca   :  { %v5183_v28 = vpop.f32.mrf.mxu0  ;;  %v5217_v29 = vpop.f32.mrf.mxu1  ;;  %v3637_v38 = vsel %vm343_vm3, 1.0, %v5500_v30  ;;  %v3720_v42 = vsel %vm769_vm5, 1.0, %v5500_v30 }
  0xcb   :  { %vm346_vm4 = vcmp.eq.f32.partialorder %v5183_v28, 4.0  ;;  %vm772_vm6 = vcmp.eq.f32.partialorder %v5217_v29, 4.0 }
  0xcc   :  { %v3640_v32 = vsel %vm346_vm4, 1.0, %v5500_v30  ;;  %v219_v33 = vpop.f32.mrf.mxu0  ;;  %v3723_v36 = vsel %vm772_vm6, 1.0, %v5500_v30  ;;  %v645_v37 = vpop.f32.mrf.mxu1 }
  0xcd   :  { %v4542_v35 = vpack.c.bf16 %v3640_v32, %v3639_v31  ;;  %vm344_vm7 = vcmp.eq.f32.partialorder %v219_v33, 4.0  ;;  %v4590_v39 = vpack.c.bf16 %v3723_v36, %v3722_v34  ;;  %vm770_vm8 = vcmp.eq.f32.partialorder %v645_v37, 4.0 }
  0xce   :  { %v3638_v40 = vsel %vm344_vm7, 1.0, %v5500_v30  ;;  %v5186_v41 = vpop.f32.mrf.mxu0  ;;  %5389 = vmatmul.mubr.msk.bf16.gmra.mxu0 %vm133_vm0, %v5561_v7  ;;  %v3721_v44 = vsel %vm770_vm8, 1.0, %v5500_v30  ;;  %v5220_v45 = vpop.f32.mrf.mxu1  ;;  %5423 = vmatmul.mubr.msk.bf16.gmra.mxu1 %vm133_vm0, %v5561_v7 }
  0xcf   :  { %4922 = vst [vmem:[#allocation2 + $0x8] sm:$0xff] %v4542_v35   ;;  %v4539_v43 = vpack.c.bf16 %v3638_v40, %v3637_v38  ;;  %5392 = vmatprep.mubr.msk.bf16.mxu0 %vm133_vm0, %v5566_v8  ;;  %4937 = vst [vmem:[#allocation2 + $0x88] sm:$0xff] %v4590_v39   ;;  %v4587_v46 = vpack.c.bf16 %v3721_v44, %v3720_v42  ;;  %5426 = vmatprep.mubr.msk.bf16.mxu1 %vm133_vm0, %v5566_v8  ;;  %vm349_vm9 = vcmp.eq.f32.partialorder %v5186_v41, 4.0 }
  0xd0   :  { %v232_v47 = vpop.f32.mrf.mxu0  ;;  %v658_v48 = vpop.f32.mrf.mxu1  ;;  %vm775_vm10 = vcmp.eq.f32.partialorder %v5220_v45, 4.0  ;;  %v3643_v51 = vsel %vm349_vm9, 1.0, %v5500_v30 }
  0xd1   :  { %4540 = vst [vmem:[#allocation2] sm:$0xff] %v4539_v43   ;;  %4588 = vst [vmem:[#allocation2 + $0x80] sm:$0xff] %v4587_v46   ;;  %vm347_vm11 = vcmp.eq.f32.partialorder %v232_v47, 4.0  ;;  %vm773_vm13 = vcmp.eq.f32.partialorder %v658_v48, 4.0  ;;  %v3726_v54 = vsel %vm775_vm10, 1.0, %v5500_v30 }
  0xd2   :  { %v5187_v49 = vpop.f32.mrf.mxu0  ;;  %v5221_v50 = vpop.f32.mrf.mxu1  ;;  %v3641_v58 = vsel %vm347_vm11, 1.0, %v5500_v30  ;;  %v3724_v62 = vsel %vm773_vm13, 1.0, %v5500_v30 }
  0xd3   :  { %vm350_vm12 = vcmp.eq.f32.partialorder %v5187_v49, 4.0  ;;  %vm776_vm14 = vcmp.eq.f32.partialorder %v5221_v50, 4.0 }
  0xd4   :  { %v3644_v52 = vsel %vm350_vm12, 1.0, %v5500_v30  ;;  %v235_v53 = vpop.f32.mrf.mxu0  ;;  %v3727_v56 = vsel %vm776_vm14, 1.0, %v5500_v30  ;;  %v661_v57 = vpop.f32.mrf.mxu1 }
  0xd5   :  { %v4548_v55 = vpack.c.bf16 %v3644_v52, %v3643_v51  ;;  %vm348_vm15 = vcmp.eq.f32.partialorder %v235_v53, 4.0  ;;  %v4596_v59 = vpack.c.bf16 %v3727_v56, %v3726_v54  ;;  %vm774_vm1 = vcmp.eq.f32.partialorder %v661_v57, 4.0 }
  0xd6   :  { %v3642_v60 = vsel %vm348_vm15, 1.0, %v5500_v30  ;;  %v5190_v61 = vpop.f32.mrf.mxu0  ;;  %5393 = vmatmul.mubr.msk.bf16.gmra.mxu0 %vm133_vm0, %v5579_v9  ;;  %v3725_v0 = vsel %vm774_vm1, 1.0, %v5500_v30  ;;  %v5224_v1 = vpop.f32.mrf.mxu1  ;;  %5427 = vmatmul.mubr.msk.bf16.gmra.mxu1 %vm133_vm0, %v5579_v9 }
  0xd7   :  { %4924 = vst [vmem:[#allocation2 + $0x18] sm:$0xff] %v4548_v55   ;;  %v4545_v63 = vpack.c.bf16 %v3642_v60, %v3641_v58  ;;  %5396 = vmatprep.mubr.msk.bf16.mxu0 %vm133_vm0, %v5584_v10  ;;  %4939 = vst [vmem:[#allocation2 + $0x98] sm:$0xff] %v4596_v59   ;;  %v4593_v2 = vpack.c.bf16 %v3725_v0, %v3724_v62  ;;  %5430 = vmatprep.mubr.msk.bf16.mxu1 %vm133_vm0, %v5584_v10  ;;  %vm353_vm2 = vcmp.eq.f32.partialorder %v5190_v61, 4.0 }
  0xd8   :  { %v248_v3 = vpop.f32.mrf.mxu0  ;;  %v674_v4 = vpop.f32.mrf.mxu1  ;;  %vm779_vm3 = vcmp.eq.f32.partialorder %v5224_v1, 4.0  ;;  %v3647_v7 = vsel %vm353_vm2, 1.0, %v5500_v30 }
  0xd9   :  { %4923 = vst [vmem:[#allocation2 + $0x10] sm:$0xff] %v4545_v63   ;;  %4938 = vst [vmem:[#allocation2 + $0x90] sm:$0xff] %v4593_v2   ;;  %vm351_vm4 = vcmp.eq.f32.partialorder %v248_v3, 4.0  ;;  %vm777_vm6 = vcmp.eq.f32.partialorder %v674_v4, 4.0  ;;  %v3730_v11 = vsel %vm779_vm3, 1.0, %v5500_v30 }
  0xda   :  { %v5191_v5 = vpop.f32.mrf.mxu0  ;;  %v5225_v6 = vpop.f32.mrf.mxu1  ;;  %v3645_v23 = vsel %vm351_vm4, 1.0, %v5500_v30  ;;  %v3728_v27 = vsel %vm777_vm6, 1.0, %v5500_v30 }
  0xdb   :  { %vm354_vm5 = vcmp.eq.f32.partialorder %v5191_v5, 4.0  ;;  %vm780_vm7 = vcmp.eq.f32.partialorder %v5225_v6, 4.0 }
  0xdc   :  { %v3648_v8 = vsel %vm354_vm5, 1.0, %v5500_v30  ;;  %v251_v9 = vpop.f32.mrf.mxu0  ;;  %v3731_v10 = vsel %vm780_vm7, 1.0, %v5500_v30  ;;  %v677_v22 = vpop.f32.mrf.mxu1 }
  0xdd   :  { %v4554_v12 = vpack.c.bf16 %v3648_v8, %v3647_v7  ;;  %vm352_vm8 = vcmp.eq.f32.partialorder %v251_v9, 4.0  ;;  %v4602_v24 = vpack.c.bf16 %v3731_v10, %v3730_v11  ;;  %vm778_vm9 = vcmp.eq.f32.partialorder %v677_v22, 4.0 }
  0xde   :  { %v3646_v25 = vsel %vm352_vm8, 1.0, %v5500_v30  ;;  %v5194_v26 = vpop.f32.mrf.mxu0  ;;  %5397 = vmatmul.mubr.msk.bf16.gmra.mxu0 %vm133_vm0, %v5603_v13  ;;  %v3729_v29 = vsel %vm778_vm9, 1.0, %v5500_v30  ;;  %v5228_v31 = vpop.f32.mrf.mxu1  ;;  %5431 = vmatmul.mubr.msk.bf16.gmra.mxu1 %vm133_vm0, %v5603_v13 }
  0xdf   :  { %4926 = vst [vmem:[#allocation2 + $0x28] sm:$0xff] %v4554_v12   ;;  %v4551_v28 = vpack.c.bf16 %v3646_v25, %v3645_v23  ;;  %5400 = vmatprep.mubr.msk.bf16.mxu0 %vm133_vm0, %v5608_v14  ;;  %4941 = vst [vmem:[#allocation2 + $0xa8] sm:$0xff] %v4602_v24   ;;  %v4599_v32 = vpack.c.bf16 %v3729_v29, %v3728_v27  ;;  %5434 = vmatprep.mubr.msk.bf16.mxu1 %vm133_vm0, %v5608_v14  ;;  %vm357_vm10 = vcmp.eq.f32.partialorder %v5194_v26, 4.0 }
  0xe0   :  { %v264_v33 = vpop.f32.mrf.mxu0  ;;  %v690_v34 = vpop.f32.mrf.mxu1  ;;  %vm783_vm11 = vcmp.eq.f32.partialorder %v5228_v31, 4.0  ;;  %v3651_v13 = vsel %vm357_vm10, 1.0, %v5500_v30 }
  0xe1   :  { %4925 = vst [vmem:[#allocation2 + $0x20] sm:$0xff] %v4551_v28   ;;  %4940 = vst [vmem:[#allocation2 + $0xa0] sm:$0xff] %v4599_v32   ;;  %vm355_vm12 = vcmp.eq.f32.partialorder %v264_v33, 4.0  ;;  %vm781_vm14 = vcmp.eq.f32.partialorder %v690_v34, 4.0  ;;  %v3734_v39 = vsel %vm783_vm11, 1.0, %v5500_v30 }
  0xe2   :  { %v5195_v35 = vpop.f32.mrf.mxu0  ;;  %v5229_v36 = vpop.f32.mrf.mxu1  ;;  %v3649_v42 = vsel %vm355_vm12, 1.0, %v5500_v30  ;;  %v3732_v46 = vsel %vm781_vm14, 1.0, %v5500_v30 }
  0xe3   :  { %vm358_vm13 = vcmp.eq.f32.partialorder %v5195_v35, 4.0  ;;  %vm784_vm15 = vcmp.eq.f32.partialorder %v5229_v36, 4.0 }
  0xe4   :  { %v3652_v37 = vsel %vm358_vm13, 1.0, %v5500_v30  ;;  %v267_v38 = vpop.f32.mrf.mxu0  ;;  %v3735_v14 = vsel %vm784_vm15, 1.0, %v5500_v30  ;;  %v693_v41 = vpop.f32.mrf.mxu1 }
  0xe5   :  { %v4560_v40 = vpack.c.bf16 %v3652_v37, %v3651_v13  ;;  %vm356_vm1 = vcmp.eq.f32.partialorder %v267_v38, 4.0  ;;  %v4608_v43 = vpack.c.bf16 %v3735_v14, %v3734_v39  ;;  %vm782_vm2 = vcmp.eq.f32.partialorder %v693_v41, 4.0 }
  0xe6   :  { %v3650_v44 = vsel %vm356_vm1, 1.0, %v5500_v30  ;;  %v5198_v45 = vpop.f32.mrf.mxu0  ;;  %5401 = vmatmul.mubr.msk.bf16.gmra.mxu0 %vm133_vm0, %v5621_v15  ;;  %v3733_v48 = vsel %vm782_vm2, 1.0, %v5500_v30  ;;  %v5232_v49 = vpop.f32.mrf.mxu1  ;;  %5435 = vmatmul.mubr.msk.bf16.gmra.mxu1 %vm133_vm0, %v5621_v15 }
  0xe7   :  { %4928 = vst [vmem:[#allocation2 + $0x38] sm:$0xff] %v4560_v40   ;;  %v4557_v47 = vpack.c.bf16 %v3650_v44, %v3649_v42  ;;  %5404 = vmatprep.mubr.msk.bf16.mxu0 %vm133_vm0, %v5626_v16  ;;  %4943 = vst [vmem:[#allocation2 + $0xb8] sm:$0xff] %v4608_v43   ;;  %v4605_v50 = vpack.c.bf16 %v3733_v48, %v3732_v46  ;;  %5438 = vmatprep.mubr.msk.bf16.mxu1 %vm133_vm0, %v5626_v16  ;;  %vm361_vm3 = vcmp.eq.f32.partialorder %v5198_v45, 4.0 }
  0xe8   :  { %v280_v51 = vpop.f32.mrf.mxu0  ;;  %v706_v52 = vpop.f32.mrf.mxu1  ;;  %vm787_vm4 = vcmp.eq.f32.partialorder %v5232_v49, 4.0  ;;  %v3655_v15 = vsel %vm361_vm3, 1.0, %v5500_v30 }
  0xe9   :  { %4927 = vst [vmem:[#allocation2 + $0x30] sm:$0xff] %v4557_v47   ;;  %4942 = vst [vmem:[#allocation2 + $0xb0] sm:$0xff] %v4605_v50   ;;  %vm359_vm5 = vcmp.eq.f32.partialorder %v280_v51, 4.0  ;;  %vm785_vm7 = vcmp.eq.f32.partialorder %v706_v52, 4.0  ;;  %v3738_v57 = vsel %vm787_vm4, 1.0, %v5500_v30 }
  0xea   :  { %v5199_v53 = vpop.f32.mrf.mxu0  ;;  %v5233_v54 = vpop.f32.mrf.mxu1  ;;  %v3653_v60 = vsel %vm359_vm5, 1.0, %v5500_v30  ;;  %v3736_v0 = vsel %vm785_vm7, 1.0, %v5500_v30 }
  0xeb   :  { %vm362_vm6 = vcmp.eq.f32.partialorder %v5199_v53, 4.0  ;;  %vm788_vm8 = vcmp.eq.f32.partialorder %v5233_v54, 4.0 }
  0xec   :  { %v3656_v55 = vsel %vm362_vm6, 1.0, %v5500_v30  ;;  %v283_v56 = vpop.f32.mrf.mxu0  ;;  %v3739_v16 = vsel %vm788_vm8, 1.0, %v5500_v30  ;;  %v709_v59 = vpop.f32.mrf.mxu1 }
  0xed   :  { %v4566_v58 = vpack.c.bf16 %v3656_v55, %v3655_v15  ;;  %vm360_vm9 = vcmp.eq.f32.partialorder %v283_v56, 4.0  ;;  %v4614_v61 = vpack.c.bf16 %v3739_v16, %v3738_v57  ;;  %vm786_vm10 = vcmp.eq.f32.partialorder %v709_v59, 4.0 }
  0xee   :  { %v3654_v62 = vsel %vm360_vm9, 1.0, %v5500_v30  ;;  %v5202_v63 = vpop.f32.mrf.mxu0  ;;  %5405 = vmatmul.mubr.msk.bf16.gmra.mxu0 %vm133_vm0, %v5639_v17  ;;  %v3737_v2 = vsel %vm786_vm10, 1.0, %v5500_v30  ;;  %v5236_v3 = vpop.f32.mrf.mxu1  ;;  %5439 = vmatmul.mubr.msk.bf16.gmra.mxu1 %vm133_vm0, %v5639_v17 }
  0xef   :  { %4930 = vst [vmem:[#allocation2 + $0x48] sm:$0xff] %v4566_v58   ;;  %v4563_v1 = vpack.c.bf16 %v3654_v62, %v3653_v60  ;;  %5408 = vmatprep.mubr.msk.bf16.mxu0 %vm133_vm0, %v5644_v18  ;;  %4945 = vst [vmem:[#allocation2 + $0xc8] sm:$0xff] %v4614_v61   ;;  %v4611_v4 = vpack.c.bf16 %v3737_v2, %v3736_v0  ;;  %5442 = vmatprep.mubr.msk.bf16.mxu1 %vm133_vm0, %v5644_v18  ;;  %vm365_vm11 = vcmp.eq.f32.partialorder %v5202_v63, 4.0 }
  0xf0   :  { %v296_v5 = vpop.f32.mrf.mxu0  ;;  %v722_v6 = vpop.f32.mrf.mxu1  ;;  %vm791_vm12 = vcmp.eq.f32.partialorder %v5236_v3, 4.0  ;;  %v3659_v17 = vsel %vm365_vm11, 1.0, %v5500_v30 }
  0xf1   :  { %4929 = vst [vmem:[#allocation2 + $0x40] sm:$0xff] %v4563_v1   ;;  %4944 = vst [vmem:[#allocation2 + $0xc0] sm:$0xff] %v4611_v4   ;;  %vm363_vm13 = vcmp.eq.f32.partialorder %v296_v5, 4.0  ;;  %vm789_vm15 = vcmp.eq.f32.partialorder %v722_v6, 4.0  ;;  %v3742_v12 = vsel %vm791_vm12, 1.0, %v5500_v30 }
  0xf2   :  { %v5203_v7 = vpop.f32.mrf.mxu0  ;;  %v5237_v8 = vpop.f32.mrf.mxu1  ;;  %v3657_v23 = vsel %vm363_vm13, 1.0, %v5500_v30  ;;  %v3740_v27 = vsel %vm789_vm15, 1.0, %v5500_v30 }
  0xf3   :  { %vm366_vm14 = vcmp.eq.f32.partialorder %v5203_v7, 4.0  ;;  %vm792_vm1 = vcmp.eq.f32.partialorder %v5237_v8, 4.0 }
  0xf4   :  { %v3660_v9 = vsel %vm366_vm14, 1.0, %v5500_v30  ;;  %v299_v11 = vpop.f32.mrf.mxu0  ;;  %v3743_v18 = vsel %vm792_vm1, 1.0, %v5500_v30  ;;  %v725_v22 = vpop.f32.mrf.mxu1 }
  0xf5   :  { %v4572_v10 = vpack.c.bf16 %v3660_v9, %v3659_v17  ;;  %vm364_vm2 = vcmp.eq.f32.partialorder %v299_v11, 4.0  ;;  %v4620_v24 = vpack.c.bf16 %v3743_v18, %v3742_v12  ;;  %vm790_vm3 = vcmp.eq.f32.partialorder %v725_v22, 4.0 }
  0xf6   :  { %v3658_v25 = vsel %vm364_vm2, 1.0, %v5500_v30  ;;  %v5206_v26 = vpop.f32.mrf.mxu0  ;;  %5409 = vmatmul.mubr.msk.bf16.gmra.mxu0 %vm133_vm0, %v5657_v19  ;;  %v3741_v29 = vsel %vm790_vm3, 1.0, %v5500_v30  ;;  %v5240_v31 = vpop.f32.mrf.mxu1  ;;  %5443 = vmatmul.mubr.msk.bf16.gmra.mxu1 %vm133_vm0, %v5657_v19 }
  0xf7   :  { %4932 = vst [vmem:[#allocation2 + $0x58] sm:$0xff] %v4572_v10   ;;  %v4569_v28 = vpack.c.bf16 %v3658_v25, %v3657_v23  ;;  %5412 = vmatprep.mubr.msk.bf16.mxu0 %vm133_vm0, %v5662_v20  ;;  %4947 = vst [vmem:[#allocation2 + $0xd8] sm:$0xff] %v4620_v24   ;;  %v4617_v32 = vpack.c.bf16 %v3741_v29, %v3740_v27  ;;  %5446 = vmatprep.mubr.msk.bf16.mxu1 %vm133_vm0, %v5662_v20  ;;  %vm369_vm4 = vcmp.eq.f32.partialorder %v5206_v26, 4.0 }
  0xf8   :  { %v312_v33 = vpop.f32.mrf.mxu0  ;;  %v738_v34 = vpop.f32.mrf.mxu1  ;;  %vm795_vm5 = vcmp.eq.f32.partialorder %v5240_v31, 4.0  ;;  %v3663_v19 = vsel %vm369_vm4, 1.0, %v5500_v30 }
  0xf9   :  { %4931 = vst [vmem:[#allocation2 + $0x50] sm:$0xff] %v4569_v28   ;;  %4946 = vst [vmem:[#allocation2 + $0xd0] sm:$0xff] %v4617_v32   ;;  %vm367_vm6 = vcmp.eq.f32.partialorder %v312_v33, 4.0  ;;  %vm793_vm8 = vcmp.eq.f32.partialorder %v738_v34, 4.0  ;;  %v3746_v38 = vsel %vm795_vm5, 1.0, %v5500_v30 }
  0xfa   :  { %v5207_v35 = vpop.f32.mrf.mxu0  ;;  %v5241_v36 = vpop.f32.mrf.mxu1  ;;  %v3661_v14 = vsel %vm367_vm6, 1.0, %v5500_v30  ;;  %v3744_v44 = vsel %vm793_vm8, 1.0, %v5500_v30 }
  0xfb   :  { %vm370_vm7 = vcmp.eq.f32.partialorder %v5207_v35, 4.0  ;;  %vm796_vm9 = vcmp.eq.f32.partialorder %v5241_v36, 4.0 }
  0xfc   :  { %v3664_v13 = vsel %vm370_vm7, 1.0, %v5500_v30  ;;  %v315_v37 = vpop.f32.mrf.mxu0  ;;  %v3747_v20 = vsel %vm796_vm9, 1.0, %v5500_v30  ;;  %v741_v40 = vpop.f32.mrf.mxu1 }
  0xfd   :  { %v4578_v39 = vpack.c.bf16 %v3664_v13, %v3663_v19  ;;  %vm368_vm10 = vcmp.eq.f32.partialorder %v315_v37, 4.0  ;;  %v4626_v41 = vpack.c.bf16 %v3747_v20, %v3746_v38  ;;  %vm794_vm11 = vcmp.eq.f32.partialorder %v741_v40, 4.0 }
  0xfe   :  { %v3662_v42 = vsel %vm368_vm10, 1.0, %v5500_v30  ;;  %v5210_v43 = vpop.f32.mrf.mxu0  ;;  %5413 = vmatmul.mubr.msk.bf16.gmra.mxu0 %vm133_vm0, %v5675_v21  ;;  %v3745_v46 = vsel %vm794_vm11, 1.0, %v5500_v30  ;;  %v5244_v47 = vpop.f32.mrf.mxu1  ;;  %5447 = vmatmul.mubr.msk.bf16.gmra.mxu1 %vm133_vm0, %v5675_v21 }
  0xff   :  { %4934 = vst [vmem:[#allocation2 + $0x68] sm:$0xff] %v4578_v39   ;;  %v4575_v45 = vpack.c.bf16 %v3662_v42, %v3661_v14  ;;  %4949 = vst [vmem:[#allocation2 + $0xe8] sm:$0xff] %v4626_v41   ;;  %v4623_v48 = vpack.c.bf16 %v3745_v46, %v3744_v44  ;;  %vm373_vm12 = vcmp.eq.f32.partialorder %v5210_v43, 4.0  ;;  %vm799_vm13 = vcmp.eq.f32.partialorder %v5244_v47, 4.0 }
 0x100   :  { %v328_v49 = vpop.f32.mrf.mxu0  ;;  %v754_v50 = vpop.f32.mrf.mxu1  ;;  %v3667_v53 = vsel %vm373_vm12, 1.0, %v5500_v30  ;;  %v3750_v21 = vsel %vm799_vm13, 1.0, %v5500_v30 }
 0x101   :  { %4933 = vst [vmem:[#allocation2 + $0x60] sm:$0xff] %v4575_v45   ;;  %4948 = vst [vmem:[#allocation2 + $0xe0] sm:$0xff] %v4623_v48   ;;  %vm371_vm14 = vcmp.eq.f32.partialorder %v328_v49, 4.0  ;;  %vm797_vm1 = vcmp.eq.f32.partialorder %v754_v50, 4.0 }
 0x102   :  { %v5211_v51 = vpop.f32.mrf.mxu0  ;;  %v5245_v52 = vpop.f32.mrf.mxu1  ;;  %v3665_v58 = vsel %vm371_vm14, 1.0, %v5500_v30  ;;  %v3748_v61 = vsel %vm797_vm1, 1.0, %v5500_v30 }
 0x103   :  { %vm374_vm15 = vcmp.eq.f32.partialorder %v5211_v51, 4.0  ;;  %vm800_vm2 = vcmp.eq.f32.partialorder %v5245_v52, 4.0 }
 0x104   :  { %v3668_v54 = vsel %vm374_vm15, 1.0, %v5500_v30  ;;  %v331_v15 = vpop.f32.mrf.mxu0  ;;  %v3751_v56 = vsel %vm800_vm2, 1.0, %v5500_v30  ;;  %v757_v57 = vpop.f32.mrf.mxu1 }
 0x105   :  { %v4584_v55 = vpack.c.bf16 %v3668_v54, %v3667_v53  ;;  %vm372_vm0 = vcmp.eq.f32.partialorder %v331_v15, 4.0  ;;  %v4632_v16 = vpack.c.bf16 %v3751_v56, %v3750_v21  ;;  %vm798_vm3 = vcmp.eq.f32.partialorder %v757_v57, 4.0 }
 0x106   :  { %v3666_v59 = vsel %vm372_vm0, 1.0, %v5500_v30  ;;  %v5250_v60 = vpop.f32.mrf.mxu0  ;;  %v3749_v63 = vsel %vm798_vm3, 1.0, %v5500_v30  ;;  %v5284_v0 = vpop.f32.mrf.mxu1 }
 0x107   :  { %4936 = vst [vmem:[#allocation2 + $0x78] sm:$0xff] %v4584_v55   ;;  %v4581_v62 = vpack.c.bf16 %v3666_v59, %v3665_v58  ;;  %4951 = vst [vmem:[#allocation2 + $0xf8] sm:$0xff] %v4632_v16   ;;  %v4629_v1 = vpack.c.bf16 %v3749_v63, %v3748_v61  ;;  %vm1198_vm4 = vcmp.eq.f32.partialorder %v5250_v60, 4.0  ;;  %vm1625_vm5 = vcmp.eq.f32.partialorder %v5284_v0, 4.0 }
 0x108   :  { %v1069_v2 = vpop.f32.mrf.mxu0  ;;  %v1496_v3 = vpop.f32.mrf.mxu1  ;;  %v3805_v6 = vsel %vm1198_vm4, 1.0, %v5500_v30  ;;  %v3888_v17 = vsel %vm1625_vm5, 1.0, %v5500_v30 }
 0x109   :  { %4935 = vst [vmem:[#allocation2 + $0x70] sm:$0xff] %v4581_v62   ;;  %4950 = vst [vmem:[#allocation2 + $0xf0] sm:$0xff] %v4629_v1   ;;  %vm1196_vm6 = vcmp.eq.f32.partialorder %v1069_v2, 4.0  ;;  %vm1623_vm8 = vcmp.eq.f32.partialorder %v1496_v3, 4.0 }
 0x10a   :  { %v5251_v4 = vpop.f32.mrf.mxu0  ;;  %v5285_v5 = vpop.f32.mrf.mxu1  ;;  %v3803_v10 = vsel %vm1196_vm6, 1.0, %v5500_v30  ;;  %v3886_v24 = vsel %vm1623_vm8, 1.0, %v5500_v30 }
 0x10b   :  { %vm1199_vm7 = vcmp.eq.f32.partialorder %v5251_v4, 4.0  ;;  %vm1626_vm9 = vcmp.eq.f32.partialorder %v5285_v5, 4.0 }
 0x10c   :  { %v3806_v7 = vsel %vm1199_vm7, 1.0, %v5500_v30  ;;  %v1072_v8 = vpop.f32.mrf.mxu0  ;;  %v3889_v11 = vsel %vm1626_vm9, 1.0, %v5500_v30  ;;  %v1499_v12 = vpop.f32.mrf.mxu1 }
 0x10d   :  { %v4638_v9 = vpack.c.bf16 %v3806_v7, %v3805_v6  ;;  %vm1197_vm10 = vcmp.eq.f32.partialorder %v1072_v8, 4.0  ;;  %v4686_v18 = vpack.c.bf16 %v3889_v11, %v3888_v17  ;;  %vm1624_vm11 = vcmp.eq.f32.partialorder %v1499_v12, 4.0 }
 0x10e   :  { %v3804_v22 = vsel %vm1197_vm10, 1.0, %v5500_v30  ;;  %v5254_v23 = vpop.f32.mrf.mxu0  ;;  %v3887_v26 = vsel %vm1624_vm11, 1.0, %v5500_v30  ;;  %v5288_v27 = vpop.f32.mrf.mxu1 }
 0x10f   :  { %4952 = vst [vmem:[#allocation2 + $0x108] sm:$0xff] %v4638_v9   ;;  %v4635_v25 = vpack.c.bf16 %v3804_v22, %v3803_v10  ;;  %4967 = vst [vmem:[#allocation2 + $0x188] sm:$0xff] %v4686_v18   ;;  %v4683_v28 = vpack.c.bf16 %v3887_v26, %v3886_v24  ;;  %vm1202_vm12 = vcmp.eq.f32.partialorder %v5254_v23, 4.0  ;;  %vm1629_vm13 = vcmp.eq.f32.partialorder %v5288_v27, 4.0 }
 0x110   :  { %v1085_v29 = vpop.f32.mrf.mxu0  ;;  %v1512_v31 = vpop.f32.mrf.mxu1  ;;  %v3809_v34 = vsel %vm1202_vm12, 1.0, %v5500_v30  ;;  %v3892_v19 = vsel %vm1629_vm13, 1.0, %v5500_v30 }
 0x111   :  { %4636 = vst [vmem:[#allocation2 + $0x100] sm:$0xff] %v4635_v25   ;;  %4684 = vst [vmem:[#allocation2 + $0x180] sm:$0xff] %v4683_v28   ;;  %vm1200_vm14 = vcmp.eq.f32.partialorder %v1085_v29, 4.0  ;;  %vm1627_vm1 = vcmp.eq.f32.partialorder %v1512_v31, 4.0 }
 0x112   :  { %v5255_v32 = vpop.f32.mrf.mxu0  ;;  %v5289_v33 = vpop.f32.mrf.mxu1  ;;  %v3807_v39 = vsel %vm1200_vm14, 1.0, %v5500_v30  ;;  %v3890_v41 = vsel %vm1627_vm1, 1.0, %v5500_v30 }
 0x113   :  { %vm1203_vm15 = vcmp.eq.f32.partialorder %v5255_v32, 4.0  ;;  %vm1630_vm2 = vcmp.eq.f32.partialorder %v5289_v33, 4.0 }
 0x114   :  { %v3810_v35 = vsel %vm1203_vm15, 1.0, %v5500_v30  ;;  %v1088_v36 = vpop.f32.mrf.mxu0  ;;  %v3893_v37 = vsel %vm1630_vm2, 1.0, %v5500_v30  ;;  %v1515_v38 = vpop.f32.mrf.mxu1 }
 0x115   :  { %v4644_v13 = vpack.c.bf16 %v3810_v35, %v3809_v34  ;;  %vm1201_vm0 = vcmp.eq.f32.partialorder %v1088_v36, 4.0  ;;  %v4692_v20 = vpack.c.bf16 %v3893_v37, %v3892_v19  ;;  %vm1628_vm3 = vcmp.eq.f32.partialorder %v1515_v38, 4.0 }
 0x116   :  { %v3808_v40 = vsel %vm1201_vm0, 1.0, %v5500_v30  ;;  %v5258_v14 = vpop.f32.mrf.mxu0  ;;  %v3891_v43 = vsel %vm1628_vm3, 1.0, %v5500_v30  ;;  %v5292_v44 = vpop.f32.mrf.mxu1 }
 0x117   :  { %4954 = vst [vmem:[#allocation2 + $0x118] sm:$0xff] %v4644_v13   ;;  %v4641_v42 = vpack.c.bf16 %v3808_v40, %v3807_v39  ;;  %4969 = vst [vmem:[#allocation2 + $0x198] sm:$0xff] %v4692_v20   ;;  %v4689_v45 = vpack.c.bf16 %v3891_v43, %v3890_v41  ;;  %vm1206_vm4 = vcmp.eq.f32.partialorder %v5258_v14, 4.0  ;;  %vm1633_vm5 = vcmp.eq.f32.partialorder %v5292_v44, 4.0 }
 0x118   :  { %v1101_v46 = vpop.f32.mrf.mxu0  ;;  %v1528_v47 = vpop.f32.mrf.mxu1  ;;  %v3813_v50 = vsel %vm1206_vm4, 1.0, %v5500_v30  ;;  %v3896_v53 = vsel %vm1633_vm5, 1.0, %v5500_v30 }
 0x119   :  { %4953 = vst [vmem:[#allocation2 + $0x110] sm:$0xff] %v4641_v42   ;;  %4968 = vst [vmem:[#allocation2 + $0x190] sm:$0xff] %v4689_v45   ;;  %vm1204_vm6 = vcmp.eq.f32.partialorder %v1101_v46, 4.0  ;;  %vm1631_vm8 = vcmp.eq.f32.partialorder %v1528_v47, 4.0 }
 0x11a   :  { %v5259_v48 = vpop.f32.mrf.mxu0  ;;  %v5293_v49 = vpop.f32.mrf.mxu1  ;;  %v3811_v55 = vsel %vm1204_vm6, 1.0, %v5500_v30  ;;  %v3894_v16 = vsel %vm1631_vm8, 1.0, %v5500_v30 }
 0x11b   :  { %vm1207_vm7 = vcmp.eq.f32.partialorder %v5259_v48, 4.0  ;;  %vm1634_vm9 = vcmp.eq.f32.partialorder %v5293_v49, 4.0 }
 0x11c   :  { %v3814_v51 = vsel %vm1207_vm7, 1.0, %v5500_v30  ;;  %v1104_v52 = vpop.f32.mrf.mxu0  ;;  %v3897_v15 = vsel %vm1634_vm9, 1.0, %v5500_v30  ;;  %v1531_v21 = vpop.f32.mrf.mxu1 }
 0x11d   :  { %v4650_v54 = vpack.c.bf16 %v3814_v51, %v3813_v50  ;;  %vm1205_vm10 = vcmp.eq.f32.partialorder %v1104_v52, 4.0  ;;  %v4698_v56 = vpack.c.bf16 %v3897_v15, %v3896_v53  ;;  %vm1632_vm11 = vcmp.eq.f32.partialorder %v1531_v21, 4.0 }
 0x11e   :  { %v3812_v57 = vsel %vm1205_vm10, 1.0, %v5500_v30  ;;  %v5262_v58 = vpop.f32.mrf.mxu0  ;;  %v3895_v60 = vsel %vm1632_vm11, 1.0, %v5500_v30  ;;  %v5296_v61 = vpop.f32.mrf.mxu1 }
 0x11f   :  { %4956 = vst [vmem:[#allocation2 + $0x128] sm:$0xff] %v4650_v54   ;;  %v4647_v59 = vpack.c.bf16 %v3812_v57, %v3811_v55  ;;  %4971 = vst [vmem:[#allocation2 + $0x1a8] sm:$0xff] %v4698_v56   ;;  %v4695_v62 = vpack.c.bf16 %v3895_v60, %v3894_v16  ;;  %vm1210_vm12 = vcmp.eq.f32.partialorder %v5262_v58, 4.0  ;;  %vm1637_vm13 = vcmp.eq.f32.partialorder %v5296_v61, 4.0 }
 0x120   :  { %v1117_v63 = vpop.f32.mrf.mxu0  ;;  %v1544_v0 = vpop.f32.mrf.mxu1  ;;  %v3817_v3 = vsel %vm1210_vm12, 1.0, %v5500_v30  ;;  %v3900_v6 = vsel %vm1637_vm13, 1.0, %v5500_v30 }
 0x121   :  { %4955 = vst [vmem:[#allocation2 + $0x120] sm:$0xff] %v4647_v59   ;;  %4970 = vst [vmem:[#allocation2 + $0x1a0] sm:$0xff] %v4695_v62   ;;  %vm1208_vm14 = vcmp.eq.f32.partialorder %v1117_v63, 4.0  ;;  %vm1635_vm1 = vcmp.eq.f32.partialorder %v1544_v0, 4.0 }
 0x122   :  { %v5263_v1 = vpop.f32.mrf.mxu0  ;;  %v5297_v2 = vpop.f32.mrf.mxu1  ;;  %v3815_v9 = vsel %vm1208_vm14, 1.0, %v5500_v30  ;;  %v3898_v18 = vsel %vm1635_vm1, 1.0, %v5500_v30 }
 0x123   :  { %vm1211_vm15 = vcmp.eq.f32.partialorder %v5263_v1, 4.0  ;;  %vm1638_vm2 = vcmp.eq.f32.partialorder %v5297_v2, 4.0 }
 0x124   :  { %v3818_v4 = vsel %vm1211_vm15, 1.0, %v5500_v30  ;;  %v1120_v5 = vpop.f32.mrf.mxu0  ;;  %v3901_v8 = vsel %vm1638_vm2, 1.0, %v5500_v30  ;;  %v1547_v17 = vpop.f32.mrf.mxu1 }
 0x125   :  { %v4656_v7 = vpack.c.bf16 %v3818_v4, %v3817_v3  ;;  %vm1209_vm0 = vcmp.eq.f32.partialorder %v1120_v5, 4.0  ;;  %v4704_v11 = vpack.c.bf16 %v3901_v8, %v3900_v6  ;;  %vm1636_vm3 = vcmp.eq.f32.partialorder %v1547_v17, 4.0 }
 0x126   :  { %v3816_v12 = vsel %vm1209_vm0, 1.0, %v5500_v30  ;;  %v5266_v10 = vpop.f32.mrf.mxu0  ;;  %v3899_v23 = vsel %vm1636_vm3, 1.0, %v5500_v30  ;;  %v5300_v24 = vpop.f32.mrf.mxu1 }
 0x127   :  { %4958 = vst [vmem:[#allocation2 + $0x138] sm:$0xff] %v4656_v7   ;;  %v4653_v22 = vpack.c.bf16 %v3816_v12, %v3815_v9  ;;  %4973 = vst [vmem:[#allocation2 + $0x1b8] sm:$0xff] %v4704_v11   ;;  %v4701_v25 = vpack.c.bf16 %v3899_v23, %v3898_v18  ;;  %vm1214_vm4 = vcmp.eq.f32.partialorder %v5266_v10, 4.0  ;;  %vm1641_vm5 = vcmp.eq.f32.partialorder %v5300_v24, 4.0 }
 0x128   :  { %v1133_v26 = vpop.f32.mrf.mxu0  ;;  %v1560_v27 = vpop.f32.mrf.mxu1  ;;  %v3821_v31 = vsel %vm1214_vm4, 1.0, %v5500_v30  ;;  %v3904_v34 = vsel %vm1641_vm5, 1.0, %v5500_v30 }
 0x129   :  { %4957 = vst [vmem:[#allocation2 + $0x130] sm:$0xff] %v4653_v22   ;;  %4972 = vst [vmem:[#allocation2 + $0x1b0] sm:$0xff] %v4701_v25   ;;  %vm1212_vm6 = vcmp.eq.f32.partialorder %v1133_v26, 4.0  ;;  %vm1639_vm8 = vcmp.eq.f32.partialorder %v1560_v27, 4.0 }
 0x12a   :  { %v5267_v28 = vpop.f32.mrf.mxu0  ;;  %v5301_v29 = vpop.f32.mrf.mxu1  ;;  %v3819_v13 = vsel %vm1212_vm6, 1.0, %v5500_v30  ;;  %v3902_v20 = vsel %vm1639_vm8, 1.0, %v5500_v30 }
 0x12b   :  { %vm1215_vm7 = vcmp.eq.f32.partialorder %v5267_v28, 4.0  ;;  %vm1642_vm9 = vcmp.eq.f32.partialorder %v5301_v29, 4.0 }
 0x12c   :  { %v3822_v32 = vsel %vm1215_vm7, 1.0, %v5500_v30  ;;  %v1136_v33 = vpop.f32.mrf.mxu0  ;;  %v3905_v36 = vsel %vm1642_vm9, 1.0, %v5500_v30  ;;  %v1563_v19 = vpop.f32.mrf.mxu1 }
 0x12d   :  { %v4662_v35 = vpack.c.bf16 %v3822_v32, %v3821_v31  ;;  %vm1213_vm10 = vcmp.eq.f32.partialorder %v1136_v33, 4.0  ;;  %v4710_v37 = vpack.c.bf16 %v3905_v36, %v3904_v34  ;;  %vm1640_vm11 = vcmp.eq.f32.partialorder %v1563_v19, 4.0 }
 0x12e   :  { %v3820_v38 = vsel %vm1213_vm10, 1.0, %v5500_v30  ;;  %v5270_v39 = vpop.f32.mrf.mxu0  ;;  %v3903_v14 = vsel %vm1640_vm11, 1.0, %v5500_v30  ;;  %v5304_v41 = vpop.f32.mrf.mxu1 }
 0x12f   :  { %4960 = vst [vmem:[#allocation2 + $0x148] sm:$0xff] %v4662_v35   ;;  %v4659_v40 = vpack.c.bf16 %v3820_v38, %v3819_v13  ;;  %4975 = vst [vmem:[#allocation2 + $0x1c8] sm:$0xff] %v4710_v37   ;;  %v4707_v42 = vpack.c.bf16 %v3903_v14, %v3902_v20  ;;  %vm1218_vm12 = vcmp.eq.f32.partialorder %v5270_v39, 4.0  ;;  %vm1645_vm13 = vcmp.eq.f32.partialorder %v5304_v41, 4.0 }
 0x130   :  { %v1149_v43 = vpop.f32.mrf.mxu0  ;;  %v1576_v44 = vpop.f32.mrf.mxu1  ;;  %v3825_v47 = vsel %vm1218_vm12, 1.0, %v5500_v30  ;;  %v3908_v50 = vsel %vm1645_vm13, 1.0, %v5500_v30 }
 0x131   :  { %4959 = vst [vmem:[#allocation2 + $0x140] sm:$0xff] %v4659_v40   ;;  %4974 = vst [vmem:[#allocation2 + $0x1c0] sm:$0xff] %v4707_v42   ;;  %vm1216_vm14 = vcmp.eq.f32.partialorder %v1149_v43, 4.0  ;;  %vm1643_vm1 = vcmp.eq.f32.partialorder %v1576_v44, 4.0 }
 0x132   :  { %v5271_v45 = vpop.f32.mrf.mxu0  ;;  %v5305_v46 = vpop.f32.mrf.mxu1  ;;  %v3823_v54 = vsel %vm1216_vm14, 1.0, %v5500_v30  ;;  %v3906_v56 = vsel %vm1643_vm1, 1.0, %v5500_v30 }
 0x133   :  { %vm1219_vm15 = vcmp.eq.f32.partialorder %v5271_v45, 4.0  ;;  %vm1646_vm2 = vcmp.eq.f32.partialorder %v5305_v46, 4.0 }
 0x134   :  { %v3826_v48 = vsel %vm1219_vm15, 1.0, %v5500_v30  ;;  %v1152_v49 = vpop.f32.mrf.mxu0  ;;  %v3909_v52 = vsel %vm1646_vm2, 1.0, %v5500_v30  ;;  %v1579_v53 = vpop.f32.mrf.mxu1 }
 0x135   :  { %v4668_v51 = vpack.c.bf16 %v3826_v48, %v3825_v47  ;;  %vm1217_vm0 = vcmp.eq.f32.partialorder %v1152_v49, 4.0  ;;  %v4716_v15 = vpack.c.bf16 %v3909_v52, %v3908_v50  ;;  %vm1644_vm3 = vcmp.eq.f32.partialorder %v1579_v53, 4.0 }
 0x136   :  { %v3824_v21 = vsel %vm1217_vm0, 1.0, %v5500_v30  ;;  %v5274_v55 = vpop.f32.mrf.mxu0  ;;  %v3907_v58 = vsel %vm1644_vm3, 1.0, %v5500_v30  ;;  %v5308_v16 = vpop.f32.mrf.mxu1 }
 0x137   :  { %4962 = vst [vmem:[#allocation2 + $0x158] sm:$0xff] %v4668_v51   ;;  %v4665_v57 = vpack.c.bf16 %v3824_v21, %v3823_v54  ;;  %4977 = vst [vmem:[#allocation2 + $0x1d8] sm:$0xff] %v4716_v15   ;;  %v4713_v59 = vpack.c.bf16 %v3907_v58, %v3906_v56  ;;  %vm1222_vm4 = vcmp.eq.f32.partialorder %v5274_v55, 4.0  ;;  %vm1649_vm5 = vcmp.eq.f32.partialorder %v5308_v16, 4.0 }
 0x138   :  { %v1165_v60 = vpop.f32.mrf.mxu0  ;;  %v1592_v61 = vpop.f32.mrf.mxu1  ;;  %v3829_v0 = vsel %vm1222_vm4, 1.0, %v5500_v30  ;;  %v3912_v3 = vsel %vm1649_vm5, 1.0, %v5500_v30 }
 0x139   :  { %4961 = vst [vmem:[#allocation2 + $0x150] sm:$0xff] %v4665_v57   ;;  %4976 = vst [vmem:[#allocation2 + $0x1d0] sm:$0xff] %v4713_v59   ;;  %vm1220_vm6 = vcmp.eq.f32.partialorder %v1165_v60, 4.0  ;;  %vm1647_vm8 = vcmp.eq.f32.partialorder %v1592_v61, 4.0 }
 0x13a   :  { %v5275_v62 = vpop.f32.mrf.mxu0  ;;  %v5309_v63 = vpop.f32.mrf.mxu1  ;;  %v3827_v7 = vsel %vm1220_vm6, 1.0, %v5500_v30  ;;  %v3910_v11 = vsel %vm1647_vm8, 1.0, %v5500_v30 }
 0x13b   :  { %vm1223_vm7 = vcmp.eq.f32.partialorder %v5275_v62, 4.0  ;;  %vm1650_vm9 = vcmp.eq.f32.partialorder %v5309_v63, 4.0 }
 0x13c   :  { %v3830_v1 = vsel %vm1223_vm7, 1.0, %v5500_v30  ;;  %v1168_v2 = vpop.f32.mrf.mxu0  ;;  %v3913_v5 = vsel %vm1650_vm9, 1.0, %v5500_v30  ;;  %v1595_v6 = vpop.f32.mrf.mxu1 }
 0x13d   :  { %v4674_v4 = vpack.c.bf16 %v3830_v1, %v3829_v0  ;;  %vm1221_vm10 = vcmp.eq.f32.partialorder %v1168_v2, 4.0  ;;  %v4722_v8 = vpack.c.bf16 %v3913_v5, %v3912_v3  ;;  %vm1648_vm11 = vcmp.eq.f32.partialorder %v1595_v6, 4.0 }
 0x13e   :  { %v3828_v17 = vsel %vm1221_vm10, 1.0, %v5500_v30  ;;  %v5278_v9 = vpop.f32.mrf.mxu0  ;;  %v3911_v10 = vsel %vm1648_vm11, 1.0, %v5500_v30  ;;  %v5312_v18 = vpop.f32.mrf.mxu1 }
 0x13f   :  { %4964 = vst [vmem:[#allocation2 + $0x168] sm:$0xff] %v4674_v4   ;;  %v4671_v12 = vpack.c.bf16 %v3828_v17, %v3827_v7  ;;  %4979 = vst [vmem:[#allocation2 + $0x1e8] sm:$0xff] %v4722_v8   ;;  %v4719_v22 = vpack.c.bf16 %v3911_v10, %v3910_v11  ;;  %vm1226_vm12 = vcmp.eq.f32.partialorder %v5278_v9, 4.0  ;;  %vm1653_vm13 = vcmp.eq.f32.partialorder %v5312_v18, 4.0 }
 0x140   :  { %v1181_v23 = vpop.f32.mrf.mxu0  ;;  %v1608_v24 = vpop.f32.mrf.mxu1  ;;  %v3833_v27 = vsel %vm1226_vm12, 1.0, %v5500_v30  ;;  %v3916_v31 = vsel %vm1653_vm13, 1.0, %v5500_v30 }
 0x141   :  { %4963 = vst [vmem:[#allocation2 + $0x160] sm:$0xff] %v4671_v12   ;;  %4978 = vst [vmem:[#allocation2 + $0x1e0] sm:$0xff] %v4719_v22   ;;  %vm1224_vm14 = vcmp.eq.f32.partialorder %v1181_v23, 4.0  ;;  %vm1651_vm1 = vcmp.eq.f32.partialorder %v1608_v24, 4.0 }
 0x142   :  { %v5279_v25 = vpop.f32.mrf.mxu0  ;;  %v5313_v26 = vpop.f32.mrf.mxu1  ;;  %v3831_v35 = vsel %vm1224_vm14, 1.0, %v5500_v30  ;;  %v3914_v37 = vsel %vm1651_vm1, 1.0, %v5500_v30 }
 0x143   :  { %vm1227_vm15 = vcmp.eq.f32.partialorder %v5279_v25, 4.0  ;;  %vm1654_vm2 = vcmp.eq.f32.partialorder %v5313_v26, 4.0 }
 0x144   :  { %v3834_v28 = vsel %vm1227_vm15, 1.0, %v5500_v30  ;;  %v1184_v29 = vpop.f32.mrf.mxu0  ;;  %v3917_v33 = vsel %vm1654_vm2, 1.0, %v5500_v30  ;;  %v1611_v34 = vpop.f32.mrf.mxu1 }
 0x145   :  { %v4680_v32 = vpack.c.bf16 %v3834_v28, %v3833_v27  ;;  %vm1225_vm0 = vcmp.eq.f32.partialorder %v1184_v29, 4.0  ;;  %v4728_v36 = vpack.c.bf16 %v3917_v33, %v3916_v31  ;;  %vm1652_vm3 = vcmp.eq.f32.partialorder %v1611_v34, 4.0 }
 0x146   :  { %v3832_v19 = vsel %vm1225_vm0, 1.0, %v5500_v30  ;;  %v5318_v13 = vpop.f32.mrf.mxu0  ;;  %v3915_v39 = vsel %vm1652_vm3, 1.0, %v5500_v30  ;;  %v5352_v20 = vpop.f32.mrf.mxu1 }
 0x147   :  { %4966 = vst [vmem:[#allocation2 + $0x178] sm:$0xff] %v4680_v32   ;;  %v4677_v38 = vpack.c.bf16 %v3832_v19, %v3831_v35  ;;  %4981 = vst [vmem:[#allocation2 + $0x1f8] sm:$0xff] %v4728_v36   ;;  %v4725_v40 = vpack.c.bf16 %v3915_v39, %v3914_v37  ;;  %vm2052_vm4 = vcmp.eq.f32.partialorder %v5318_v13, 4.0  ;;  %vm2479_vm5 = vcmp.eq.f32.partialorder %v5352_v20, 4.0 }
 0x148   :  { %v1923_v14 = vpop.f32.mrf.mxu0  ;;  %v2350_v41 = vpop.f32.mrf.mxu1  ;;  %v3971_v44 = vsel %vm2052_vm4, 1.0, %v5500_v30  ;;  %v4054_v47 = vsel %vm2479_vm5, 1.0, %v5500_v30 }
 0x149   :  { %4965 = vst [vmem:[#allocation2 + $0x170] sm:$0xff] %v4677_v38   ;;  %4980 = vst [vmem:[#allocation2 + $0x1f0] sm:$0xff] %v4725_v40   ;;  %vm2050_vm6 = vcmp.eq.f32.partialorder %v1923_v14, 4.0  ;;  %vm2477_vm8 = vcmp.eq.f32.partialorder %v2350_v41, 4.0 }
 0x14a   :  { %v5319_v42 = vpop.f32.mrf.mxu0  ;;  %v5353_v43 = vpop.f32.mrf.mxu1  ;;  %v3969_v51 = vsel %vm2050_vm6, 1.0, %v5500_v30  ;;  %v4052_v15 = vsel %vm2477_vm8, 1.0, %v5500_v30 }
 0x14b   :  { %vm2053_vm7 = vcmp.eq.f32.partialorder %v5319_v42, 4.0  ;;  %vm2480_vm9 = vcmp.eq.f32.partialorder %v5353_v43, 4.0 }
 0x14c   :  { %v3972_v45 = vsel %vm2053_vm7, 1.0, %v5500_v30  ;;  %v1926_v46 = vpop.f32.mrf.mxu0  ;;  %v4055_v49 = vsel %vm2480_vm9, 1.0, %v5500_v30  ;;  %v2353_v50 = vpop.f32.mrf.mxu1 }
 0x14d   :  { %v4734_v48 = vpack.c.bf16 %v3972_v45, %v3971_v44  ;;  %vm2051_vm10 = vcmp.eq.f32.partialorder %v1926_v46, 4.0  ;;  %v4782_v52 = vpack.c.bf16 %v4055_v49, %v4054_v47  ;;  %vm2478_vm11 = vcmp.eq.f32.partialorder %v2353_v50, 4.0 }
 0x14e   :  { %v3970_v53 = vsel %vm2051_vm10, 1.0, %v5500_v30  ;;  %v5322_v54 = vpop.f32.mrf.mxu0  ;;  %v4053_v55 = vsel %vm2478_vm11, 1.0, %v5500_v30  ;;  %v5356_v56 = vpop.f32.mrf.mxu1 }
 0x14f   :  { %4982 = vst [vmem:[#allocation2 + $0x208] sm:$0xff] %v4734_v48   ;;  %v4731_v21 = vpack.c.bf16 %v3970_v53, %v3969_v51  ;;  %4997 = vst [vmem:[#allocation2 + $0x288] sm:$0xff] %v4782_v52   ;;  %v4779_v57 = vpack.c.bf16 %v4053_v55, %v4052_v15  ;;  %vm2056_vm12 = vcmp.eq.f32.partialorder %v5322_v54, 4.0  ;;  %vm2483_vm13 = vcmp.eq.f32.partialorder %v5356_v56, 4.0 }
 0x150   :  { %v1939_v58 = vpop.f32.mrf.mxu0  ;;  %v2366_v16 = vpop.f32.mrf.mxu1  ;;  %v3975_v61 = vsel %vm2056_vm12, 1.0, %v5500_v30  ;;  %v4058_v0 = vsel %vm2483_vm13, 1.0, %v5500_v30 }
 0x151   :  { %4732 = vst [vmem:[#allocation2 + $0x200] sm:$0xff] %v4731_v21   ;;  %4780 = vst [vmem:[#allocation2 + $0x280] sm:$0xff] %v4779_v57   ;;  %vm2054_vm14 = vcmp.eq.f32.partialorder %v1939_v58, 4.0  ;;  %vm2481_vm1 = vcmp.eq.f32.partialorder %v2366_v16, 4.0 }
 0x152   :  { %v5323_v59 = vpop.f32.mrf.mxu0  ;;  %v5357_v60 = vpop.f32.mrf.mxu1  ;;  %v3973_v4 = vsel %vm2054_vm14, 1.0, %v5500_v30  ;;  %v4056_v8 = vsel %vm2481_vm1, 1.0, %v5500_v30 }
 0x153   :  { %vm2057_vm15 = vcmp.eq.f32.partialorder %v5323_v59, 4.0  ;;  %vm2484_vm2 = vcmp.eq.f32.partialorder %v5357_v60, 4.0 }
 0x154   :  { %v3976_v62 = vsel %vm2057_vm15, 1.0, %v5500_v30  ;;  %v1942_v63 = vpop.f32.mrf.mxu0  ;;  %v4059_v2 = vsel %vm2484_vm2, 1.0, %v5500_v30  ;;  %v2369_v3 = vpop.f32.mrf.mxu1 }
 0x155   :  { %v4740_v1 = vpack.c.bf16 %v3976_v62, %v3975_v61  ;;  %vm2055_vm0 = vcmp.eq.f32.partialorder %v1942_v63, 4.0  ;;  %v4788_v5 = vpack.c.bf16 %v4059_v2, %v4058_v0  ;;  %vm2482_vm3 = vcmp.eq.f32.partialorder %v2369_v3, 4.0 }
 0x156   :  { %v3974_v6 = vsel %vm2055_vm0, 1.0, %v5500_v30  ;;  %v5326_v7 = vpop.f32.mrf.mxu0  ;;  %v4057_v9 = vsel %vm2482_vm3, 1.0, %v5500_v30  ;;  %v5360_v11 = vpop.f32.mrf.mxu1 }
 0x157   :  { %4984 = vst [vmem:[#allocation2 + $0x218] sm:$0xff] %v4740_v1   ;;  %v4737_v17 = vpack.c.bf16 %v3974_v6, %v3973_v4  ;;  %4999 = vst [vmem:[#allocation2 + $0x298] sm:$0xff] %v4788_v5   ;;  %v4785_v12 = vpack.c.bf16 %v4057_v9, %v4056_v8  ;;  %vm2060_vm4 = vcmp.eq.f32.partialorder %v5326_v7, 4.0  ;;  %vm2487_vm5 = vcmp.eq.f32.partialorder %v5360_v11, 4.0 }
 0x158   :  { %v1955_v10 = vpop.f32.mrf.mxu0  ;;  %v2382_v18 = vpop.f32.mrf.mxu1  ;;  %v3979_v24 = vsel %vm2060_vm4, 1.0, %v5500_v30  ;;  %v4062_v27 = vsel %vm2487_vm5, 1.0, %v5500_v30 }
 0x159   :  { %4983 = vst [vmem:[#allocation2 + $0x210] sm:$0xff] %v4737_v17   ;;  %4998 = vst [vmem:[#allocation2 + $0x290] sm:$0xff] %v4785_v12   ;;  %vm2058_vm6 = vcmp.eq.f32.partialorder %v1955_v10, 4.0  ;;  %vm2485_vm8 = vcmp.eq.f32.partialorder %v2382_v18, 4.0 }
 0x15a   :  { %v5327_v22 = vpop.f32.mrf.mxu0  ;;  %v5361_v23 = vpop.f32.mrf.mxu1  ;;  %v3977_v32 = vsel %vm2058_vm6, 1.0, %v5500_v30  ;;  %v4060_v36 = vsel %vm2485_vm8, 1.0, %v5500_v30 }
 0x15b   :  { %vm2061_vm7 = vcmp.eq.f32.partialorder %v5327_v22, 4.0  ;;  %vm2488_vm9 = vcmp.eq.f32.partialorder %v5361_v23, 4.0 }
 0x15c   :  { %v3980_v25 = vsel %vm2061_vm7, 1.0, %v5500_v30  ;;  %v1958_v26 = vpop.f32.mrf.mxu0  ;;  %v4063_v29 = vsel %vm2488_vm9, 1.0, %v5500_v30  ;;  %v2385_v31 = vpop.f32.mrf.mxu1 }
 0x15d   :  { %v4746_v28 = vpack.c.bf16 %v3980_v25, %v3979_v24  ;;  %vm2059_vm10 = vcmp.eq.f32.partialorder %v1958_v26, 4.0  ;;  %v4794_v33 = vpack.c.bf16 %v4063_v29, %v4062_v27  ;;  %vm2486_vm11 = vcmp.eq.f32.partialorder %v2385_v31, 4.0 }
 0x15e   :  { %v3978_v34 = vsel %vm2059_vm10, 1.0, %v5500_v30  ;;  %v5330_v35 = vpop.f32.mrf.mxu0  ;;  %v4061_v13 = vsel %vm2486_vm11, 1.0, %v5500_v30  ;;  %v5364_v37 = vpop.f32.mrf.mxu1 }
 0x15f   :  { %4986 = vst [vmem:[#allocation2 + $0x228] sm:$0xff] %v4746_v28   ;;  %v4743_v19 = vpack.c.bf16 %v3978_v34, %v3977_v32  ;;  %5001 = vst [vmem:[#allocation2 + $0x2a8] sm:$0xff] %v4794_v33   ;;  %v4791_v38 = vpack.c.bf16 %v4061_v13, %v4060_v36  ;;  %vm2064_vm12 = vcmp.eq.f32.partialorder %v5330_v35, 4.0  ;;  %vm2491_vm13 = vcmp.eq.f32.partialorder %v5364_v37, 4.0 }
 0x160   :  { %v1971_v39 = vpop.f32.mrf.mxu0  ;;  %v2398_v20 = vpop.f32.mrf.mxu1  ;;  %v3983_v41 = vsel %vm2064_vm12, 1.0, %v5500_v30  ;;  %v4066_v44 = vsel %vm2491_vm13, 1.0, %v5500_v30 }
 0x161   :  { %4985 = vst [vmem:[#allocation2 + $0x220] sm:$0xff] %v4743_v19   ;;  %5000 = vst [vmem:[#allocation2 + $0x2a0] sm:$0xff] %v4791_v38   ;;  %vm2062_vm14 = vcmp.eq.f32.partialorder %v1971_v39, 4.0  ;;  %vm2489_vm1 = vcmp.eq.f32.partialorder %v2398_v20, 4.0 }
 0x162   :  { %v5331_v40 = vpop.f32.mrf.mxu0  ;;  %v5365_v14 = vpop.f32.mrf.mxu1  ;;  %v3981_v48 = vsel %vm2062_vm14, 1.0, %v5500_v30  ;;  %v4064_v52 = vsel %vm2489_vm1, 1.0, %v5500_v30 }
 0x163   :  { %vm2065_vm15 = vcmp.eq.f32.partialorder %v5331_v40, 4.0  ;;  %vm2492_vm2 = vcmp.eq.f32.partialorder %v5365_v14, 4.0 }
 0x164   :  { %v3984_v42 = vsel %vm2065_vm15, 1.0, %v5500_v30  ;;  %v1974_v43 = vpop.f32.mrf.mxu0  ;;  %v4067_v46 = vsel %vm2492_vm2, 1.0, %v5500_v30  ;;  %v2401_v47 = vpop.f32.mrf.mxu1 }
 0x165   :  { %v4752_v45 = vpack.c.bf16 %v3984_v42, %v3983_v41  ;;  %vm2063_vm0 = vcmp.eq.f32.partialorder %v1974_v43, 4.0  ;;  %v4800_v49 = vpack.c.bf16 %v4067_v46, %v4066_v44  ;;  %vm2490_vm3 = vcmp.eq.f32.partialorder %v2401_v47, 4.0 }
 0x166   :  { %v3982_v50 = vsel %vm2063_vm0, 1.0, %v5500_v30  ;;  %v5334_v51 = vpop.f32.mrf.mxu0  ;;  %v4065_v54 = vsel %vm2490_vm3, 1.0, %v5500_v30  ;;  %v5368_v15 = vpop.f32.mrf.mxu1 }
 0x167   :  { %4988 = vst [vmem:[#allocation2 + $0x238] sm:$0xff] %v4752_v45   ;;  %v4749_v53 = vpack.c.bf16 %v3982_v50, %v3981_v48  ;;  %5003 = vst [vmem:[#allocation2 + $0x2b8] sm:$0xff] %v4800_v49   ;;  %v4797_v21 = vpack.c.bf16 %v4065_v54, %v4064_v52  ;;  %vm2068_vm4 = vcmp.eq.f32.partialorder %v5334_v51, 4.0  ;;  %vm2495_vm5 = vcmp.eq.f32.partialorder %v5368_v15, 4.0 }
 0x168   :  { %v1987_v55 = vpop.f32.mrf.mxu0  ;;  %v2414_v56 = vpop.f32.mrf.mxu1  ;;  %v3987_v16 = vsel %vm2068_vm4, 1.0, %v5500_v30  ;;  %v4070_v61 = vsel %vm2495_vm5, 1.0, %v5500_v30 }
 0x169   :  { %4987 = vst [vmem:[#allocation2 + $0x230] sm:$0xff] %v4749_v53   ;;  %5002 = vst [vmem:[#allocation2 + $0x2b0] sm:$0xff] %v4797_v21   ;;  %vm2066_vm6 = vcmp.eq.f32.partialorder %v1987_v55, 4.0  ;;  %vm2493_vm8 = vcmp.eq.f32.partialorder %v2414_v56, 4.0 }
 0x16a   :  { %v5335_v57 = vpop.f32.mrf.mxu0  ;;  %v5369_v58 = vpop.f32.mrf.mxu1  ;;  %v3985_v1 = vsel %vm2066_vm6, 1.0, %v5500_v30  ;;  %v4068_v5 = vsel %vm2493_vm8, 1.0, %v5500_v30 }
 0x16b   :  { %vm2069_vm7 = vcmp.eq.f32.partialorder %v5335_v57, 4.0  ;;  %vm2496_vm9 = vcmp.eq.f32.partialorder %v5369_v58, 4.0 }
 0x16c   :  { %v3988_v59 = vsel %vm2069_vm7, 1.0, %v5500_v30  ;;  %v1990_v60 = vpop.f32.mrf.mxu0  ;;  %v4071_v63 = vsel %vm2496_vm9, 1.0, %v5500_v30  ;;  %v2417_v0 = vpop.f32.mrf.mxu1 }
 0x16d   :  { %v4758_v62 = vpack.c.bf16 %v3988_v59, %v3987_v16  ;;  %vm2067_vm10 = vcmp.eq.f32.partialorder %v1990_v60, 4.0  ;;  %v4806_v2 = vpack.c.bf16 %v4071_v63, %v4070_v61  ;;  %vm2494_vm11 = vcmp.eq.f32.partialorder %v2417_v0, 4.0 }
 0x16e   :  { %v3986_v3 = vsel %vm2067_vm10, 1.0, %v5500_v30  ;;  %v5338_v4 = vpop.f32.mrf.mxu0  ;;  %v4069_v7 = vsel %vm2494_vm11, 1.0, %v5500_v30  ;;  %v5372_v8 = vpop.f32.mrf.mxu1 }
 0x16f   :  { %4990 = vst [vmem:[#allocation2 + $0x248] sm:$0xff] %v4758_v62   ;;  %v4755_v6 = vpack.c.bf16 %v3986_v3, %v3985_v1  ;;  %5005 = vst [vmem:[#allocation2 + $0x2c8] sm:$0xff] %v4806_v2   ;;  %v4803_v17 = vpack.c.bf16 %v4069_v7, %v4068_v5  ;;  %vm2072_vm12 = vcmp.eq.f32.partialorder %v5338_v4, 4.0  ;;  %vm2499_vm13 = vcmp.eq.f32.partialorder %v5372_v8, 4.0 }
 0x170   :  { %v2003_v9 = vpop.f32.mrf.mxu0  ;;  %v2430_v11 = vpop.f32.mrf.mxu1  ;;  %v3991_v18 = vsel %vm2072_vm12, 1.0, %v5500_v30  ;;  %v4074_v24 = vsel %vm2499_vm13, 1.0, %v5500_v30 }
 0x171   :  { %4989 = vst [vmem:[#allocation2 + $0x240] sm:$0xff] %v4755_v6   ;;  %5004 = vst [vmem:[#allocation2 + $0x2c0] sm:$0xff] %v4803_v17   ;;  %vm2070_vm14 = vcmp.eq.f32.partialorder %v2003_v9, 4.0  ;;  %vm2497_vm1 = vcmp.eq.f32.partialorder %v2430_v11, 4.0 }
 0x172   :  { %v5339_v12 = vpop.f32.mrf.mxu0  ;;  %v5373_v10 = vpop.f32.mrf.mxu1  ;;  %v3989_v28 = vsel %vm2070_vm14, 1.0, %v5500_v30  ;;  %v4072_v33 = vsel %vm2497_vm1, 1.0, %v5500_v30 }
 0x173   :  { %vm2073_vm15 = vcmp.eq.f32.partialorder %v5339_v12, 4.0  ;;  %vm2500_vm2 = vcmp.eq.f32.partialorder %v5373_v10, 4.0 }
 0x174   :  { %v3992_v22 = vsel %vm2073_vm15, 1.0, %v5500_v30  ;;  %v2006_v23 = vpop.f32.mrf.mxu0  ;;  %v4075_v26 = vsel %vm2500_vm2, 1.0, %v5500_v30  ;;  %v2433_v27 = vpop.f32.mrf.mxu1 }
 0x175   :  { %v4764_v25 = vpack.c.bf16 %v3992_v22, %v3991_v18  ;;  %vm2071_vm0 = vcmp.eq.f32.partialorder %v2006_v23, 4.0  ;;  %v4812_v29 = vpack.c.bf16 %v4075_v26, %v4074_v24  ;;  %vm2498_vm3 = vcmp.eq.f32.partialorder %v2433_v27, 4.0 }
 0x176   :  { %v3990_v31 = vsel %vm2071_vm0, 1.0, %v5500_v30  ;;  %v5342_v32 = vpop.f32.mrf.mxu0  ;;  %v4073_v35 = vsel %vm2498_vm3, 1.0, %v5500_v30  ;;  %v5376_v36 = vpop.f32.mrf.mxu1 }
 0x177   :  { %4992 = vst [vmem:[#allocation2 + $0x258] sm:$0xff] %v4764_v25   ;;  %v4761_v34 = vpack.c.bf16 %v3990_v31, %v3989_v28  ;;  %5007 = vst [vmem:[#allocation2 + $0x2d8] sm:$0xff] %v4812_v29   ;;  %v4809_v19 = vpack.c.bf16 %v4073_v35, %v4072_v33  ;;  %vm2076_vm4 = vcmp.eq.f32.partialorder %v5342_v32, 4.0  ;;  %vm2503_vm5 = vcmp.eq.f32.partialorder %v5376_v36, 4.0 }
 0x178   :  { %v2019_v13 = vpop.f32.mrf.mxu0  ;;  %v2446_v37 = vpop.f32.mrf.mxu1  ;;  %v3995_v20 = vsel %vm2076_vm4, 1.0, %v5500_v30  ;;  %v4078_v41 = vsel %vm2503_vm5, 1.0, %v5500_v30 }
 0x179   :  { %4991 = vst [vmem:[#allocation2 + $0x250] sm:$0xff] %v4761_v34   ;;  %5006 = vst [vmem:[#allocation2 + $0x2d0] sm:$0xff] %v4809_v19   ;;  %vm2074_vm6 = vcmp.eq.f32.partialorder %v2019_v13, 4.0  ;;  %vm2501_vm8 = vcmp.eq.f32.partialorder %v2446_v37, 4.0 }
 0x17a   :  { %v5343_v38 = vpop.f32.mrf.mxu0  ;;  %v5377_v39 = vpop.f32.mrf.mxu1  ;;  %v3993_v45 = vsel %vm2074_vm6, 1.0, %v5500_v30  ;;  %v4076_v49 = vsel %vm2501_vm8, 1.0, %v5500_v30 }
 0x17b   :  { %vm2077_vm7 = vcmp.eq.f32.partialorder %v5343_v38, 4.0  ;;  %vm2504_vm9 = vcmp.eq.f32.partialorder %v5377_v39, 4.0 }
 0x17c   :  { %v3996_v40 = vsel %vm2077_vm7, 1.0, %v5500_v30  ;;  %v2022_v14 = vpop.f32.mrf.mxu0  ;;  %v4079_v43 = vsel %vm2504_vm9, 1.0, %v5500_v30  ;;  %v2449_v44 = vpop.f32.mrf.mxu1 }
 0x17d   :  { %v4770_v42 = vpack.c.bf16 %v3996_v40, %v3995_v20  ;;  %vm2075_vm10 = vcmp.eq.f32.partialorder %v2022_v14, 4.0  ;;  %v4818_v46 = vpack.c.bf16 %v4079_v43, %v4078_v41  ;;  %vm2502_vm11 = vcmp.eq.f32.partialorder %v2449_v44, 4.0 }
 0x17e   :  { %v3994_v47 = vsel %vm2075_vm10, 1.0, %v5500_v30  ;;  %v5346_v48 = vpop.f32.mrf.mxu0  ;;  %v4077_v51 = vsel %vm2502_vm11, 1.0, %v5500_v30  ;;  %v5380_v52 = vpop.f32.mrf.mxu1 }
 0x17f   :  { %4994 = vst [vmem:[#allocation2 + $0x268] sm:$0xff] %v4770_v42   ;;  %v4767_v50 = vpack.c.bf16 %v3994_v47, %v3993_v45  ;;  %5009 = vst [vmem:[#allocation2 + $0x2e8] sm:$0xff] %v4818_v46   ;;  %v4815_v53 = vpack.c.bf16 %v4077_v51, %v4076_v49  ;;  %vm2080_vm12 = vcmp.eq.f32.partialorder %v5346_v48, 4.0  ;;  %vm2507_vm13 = vcmp.eq.f32.partialorder %v5380_v52, 4.0 }
 0x180   :  { %v2035_v54 = vpop.f32.mrf.mxu0  ;;  %v2462_v15 = vpop.f32.mrf.mxu1  ;;  %v3999_v56 = vsel %vm2080_vm12, 1.0, %v5500_v30  ;;  %v4082_v16 = vsel %vm2507_vm13, 1.0, %v5500_v30 }
 0x181   :  { %4993 = vst [vmem:[#allocation2 + $0x260] sm:$0xff] %v4767_v50   ;;  %5008 = vst [vmem:[#allocation2 + $0x2e0] sm:$0xff] %v4815_v53   ;;  %vm2078_vm14 = vcmp.eq.f32.partialorder %v2035_v54, 4.0  ;;  %vm2505_vm1 = vcmp.eq.f32.partialorder %v2462_v15, 4.0 }
 0x182   :  { %v5347_v21 = vpop.f32.mrf.mxu0  ;;  %v5381_v55 = vpop.f32.mrf.mxu1  ;;  %v3997_v62 = vsel %vm2078_vm14, 1.0, %v5500_v30  ;;  %v4080_v2 = vsel %vm2505_vm1, 1.0, %v5500_v30 }
 0x183   :  { %vm2081_vm15 = vcmp.eq.f32.partialorder %v5347_v21, 4.0  ;;  %vm2508_vm2 = vcmp.eq.f32.partialorder %v5381_v55, 4.0 }
 0x184   :  { %v4000_v57 = vsel %vm2081_vm15, 1.0, %v5500_v30  ;;  %v2038_v58 = vpop.f32.mrf.mxu0  ;;  %v4083_v60 = vsel %vm2508_vm2, 1.0, %v5500_v30  ;;  %v2465_v61 = vpop.f32.mrf.mxu1 }
 0x185   :  { %v4776_v59 = vpack.c.bf16 %v4000_v57, %v3999_v56  ;;  %vm2079_vm0 = vcmp.eq.f32.partialorder %v2038_v58, 4.0  ;;  %v4824_v63 = vpack.c.bf16 %v4083_v60, %v4082_v16  ;;  %vm2506_vm3 = vcmp.eq.f32.partialorder %v2465_v61, 4.0 }
 0x186   :  { %v3998_v0 = vsel %vm2079_vm0, 1.0, %v5500_v30  ;;  %v5386_v1 = vpop.f32.mrf.mxu0  ;;  %v4081_v4 = vsel %vm2506_vm3, 1.0, %v5500_v30  ;;  %v5420_v5 = vpop.f32.mrf.mxu1 }
 0x187   :  { %4996 = vst [vmem:[#allocation2 + $0x278] sm:$0xff] %v4776_v59   ;;  %v4773_v3 = vpack.c.bf16 %v3998_v0, %v3997_v62  ;;  %5011 = vst [vmem:[#allocation2 + $0x2f8] sm:$0xff] %v4824_v63   ;;  %v4821_v6 = vpack.c.bf16 %v4081_v4, %v4080_v2  ;;  %vm2906_vm4 = vcmp.eq.f32.partialorder %v5386_v1, 4.0  ;;  %vm3333_vm5 = vcmp.eq.f32.partialorder %v5420_v5, 4.0 }
 0x188   :  { %v2777_v7 = vpop.f32.mrf.mxu0  ;;  %v3204_v8 = vpop.f32.mrf.mxu1  ;;  %v4137_v11 = vsel %vm2906_vm4, 1.0, %v5500_v30  ;;  %v4220_v18 = vsel %vm3333_vm5, 1.0, %v5500_v30 }
 0x189   :  { %4995 = vst [vmem:[#allocation2 + $0x270] sm:$0xff] %v4773_v3   ;;  %5010 = vst [vmem:[#allocation2 + $0x2f0] sm:$0xff] %v4821_v6   ;;  %vm2904_vm6 = vcmp.eq.f32.partialorder %v2777_v7, 4.0  ;;  %vm3331_vm8 = vcmp.eq.f32.partialorder %v3204_v8, 4.0 }
 0x18a   :  { %v5387_v17 = vpop.f32.mrf.mxu0  ;;  %v5421_v9 = vpop.f32.mrf.mxu1  ;;  %v4135_v25 = vsel %vm2904_vm6, 1.0, %v5500_v30  ;;  %v4218_v29 = vsel %vm3331_vm8, 1.0, %v5500_v30 }
 0x18b   :  { %vm2907_vm7 = vcmp.eq.f32.partialorder %v5387_v17, 4.0  ;;  %vm3334_vm9 = vcmp.eq.f32.partialorder %v5421_v9, 4.0 }
 0x18c   :  { %v4138_v12 = vsel %vm2907_vm7, 1.0, %v5500_v30  ;;  %v2780_v10 = vpop.f32.mrf.mxu0  ;;  %v4221_v23 = vsel %vm3334_vm9, 1.0, %v5500_v30  ;;  %v3207_v24 = vpop.f32.mrf.mxu1 }
 0x18d   :  { %v4830_v22 = vpack.c.bf16 %v4138_v12, %v4137_v11  ;;  %vm2905_vm10 = vcmp.eq.f32.partialorder %v2780_v10, 4.0  ;;  %v4878_v26 = vpack.c.bf16 %v4221_v23, %v4220_v18  ;;  %vm3332_vm11 = vcmp.eq.f32.partialorder %v3207_v24, 4.0 }
 0x18e   :  { %v4136_v27 = vsel %vm2905_vm10, 1.0, %v5500_v30  ;;  %v5390_v28 = vpop.f32.mrf.mxu0  ;;  %v4219_v32 = vsel %vm3332_vm11, 1.0, %v5500_v30  ;;  %v5424_v33 = vpop.f32.mrf.mxu1 }
 0x18f   :  { %5012 = vst [vmem:[#allocation2 + $0x308] sm:$0xff] %v4830_v22   ;;  %v4827_v31 = vpack.c.bf16 %v4136_v27, %v4135_v25  ;;  %5027 = vst [vmem:[#allocation2 + $0x388] sm:$0xff] %v4878_v26   ;;  %v4875_v34 = vpack.c.bf16 %v4219_v32, %v4218_v29  ;;  %vm2910_vm12 = vcmp.eq.f32.partialorder %v5390_v28, 4.0  ;;  %vm3337_vm13 = vcmp.eq.f32.partialorder %v5424_v33, 4.0 }
 0x190   :  { %v2793_v35 = vpop.f32.mrf.mxu0  ;;  %v3220_v36 = vpop.f32.mrf.mxu1  ;;  %v4141_v37 = vsel %vm2910_vm12, 1.0, %v5500_v30  ;;  %v4224_v20 = vsel %vm3337_vm13, 1.0, %v5500_v30 }
 0x191   :  { %4828 = vst [vmem:[#allocation2 + $0x300] sm:$0xff] %v4827_v31   ;;  %4876 = vst [vmem:[#allocation2 + $0x380] sm:$0xff] %v4875_v34   ;;  %vm2908_vm14 = vcmp.eq.f32.partialorder %v2793_v35, 4.0  ;;  %vm3335_vm1 = vcmp.eq.f32.partialorder %v3220_v36, 4.0 }
 0x192   :  { %v5391_v19 = vpop.f32.mrf.mxu0  ;;  %v5425_v13 = vpop.f32.mrf.mxu1  ;;  %v4139_v42 = vsel %vm2908_vm14, 1.0, %v5500_v30  ;;  %v4222_v46 = vsel %vm3335_vm1, 1.0, %v5500_v30 }
 0x193   :  { %vm2911_vm15 = vcmp.eq.f32.partialorder %v5391_v19, 4.0  ;;  %vm3338_vm2 = vcmp.eq.f32.partialorder %v5425_v13, 4.0 }
 0x194   :  { %v4142_v38 = vsel %vm2911_vm15, 1.0, %v5500_v30  ;;  %v2796_v39 = vpop.f32.mrf.mxu0  ;;  %v4225_v14 = vsel %vm3338_vm2, 1.0, %v5500_v30  ;;  %v3223_v41 = vpop.f32.mrf.mxu1 }
 0x195   :  { %v4836_v40 = vpack.c.bf16 %v4142_v38, %v4141_v37  ;;  %vm2909_vm0 = vcmp.eq.f32.partialorder %v2796_v39, 4.0  ;;  %v4884_v43 = vpack.c.bf16 %v4225_v14, %v4224_v20  ;;  %vm3336_vm3 = vcmp.eq.f32.partialorder %v3223_v41, 4.0 }
 0x196   :  { %v4140_v44 = vsel %vm2909_vm0, 1.0, %v5500_v30  ;;  %v5394_v45 = vpop.f32.mrf.mxu0  ;;  %v4223_v48 = vsel %vm3336_vm3, 1.0, %v5500_v30  ;;  %v5428_v49 = vpop.f32.mrf.mxu1 }
 0x197   :  { %5014 = vst [vmem:[#allocation2 + $0x318] sm:$0xff] %v4836_v40   ;;  %v4833_v47 = vpack.c.bf16 %v4140_v44, %v4139_v42  ;;  %5029 = vst [vmem:[#allocation2 + $0x398] sm:$0xff] %v4884_v43   ;;  %v4881_v50 = vpack.c.bf16 %v4223_v48, %v4222_v46  ;;  %vm2914_vm4 = vcmp.eq.f32.partialorder %v5394_v45, 4.0  ;;  %vm3341_vm5 = vcmp.eq.f32.partialorder %v5428_v49, 4.0 }
 0x198   :  { %v2809_v51 = vpop.f32.mrf.mxu0  ;;  %v3236_v52 = vpop.f32.mrf.mxu1  ;;  %v4145_v15 = vsel %vm2914_vm4, 1.0, %v5500_v30  ;;  %v4228_v56 = vsel %vm3341_vm5, 1.0, %v5500_v30 }
 0x199   :  { %5013 = vst [vmem:[#allocation2 + $0x310] sm:$0xff] %v4833_v47   ;;  %5028 = vst [vmem:[#allocation2 + $0x390] sm:$0xff] %v4881_v50   ;;  %vm2912_vm6 = vcmp.eq.f32.partialorder %v2809_v51, 4.0  ;;  %vm3339_vm8 = vcmp.eq.f32.partialorder %v3236_v52, 4.0 }
 0x19a   :  { %v5395_v53 = vpop.f32.mrf.mxu0  ;;  %v5429_v54 = vpop.f32.mrf.mxu1  ;;  %v4143_v59 = vsel %vm2912_vm6, 1.0, %v5500_v30  ;;  %v4226_v63 = vsel %vm3339_vm8, 1.0, %v5500_v30 }
 0x19b   :  { %vm2915_vm7 = vcmp.eq.f32.partialorder %v5395_v53, 4.0  ;;  %vm3342_vm9 = vcmp.eq.f32.partialorder %v5429_v54, 4.0 }
 0x19c   :  { %v4146_v21 = vsel %vm2915_vm7, 1.0, %v5500_v30  ;;  %v2812_v55 = vpop.f32.mrf.mxu0  ;;  %v4229_v58 = vsel %vm3342_vm9, 1.0, %v5500_v30  ;;  %v3239_v16 = vpop.f32.mrf.mxu1 }
 0x19d   :  { %v4842_v57 = vpack.c.bf16 %v4146_v21, %v4145_v15  ;;  %vm2913_vm10 = vcmp.eq.f32.partialorder %v2812_v55, 4.0  ;;  %v4890_v60 = vpack.c.bf16 %v4229_v58, %v4228_v56  ;;  %vm3340_vm11 = vcmp.eq.f32.partialorder %v3239_v16, 4.0 }
 0x19e   :  { %v4144_v61 = vsel %vm2913_vm10, 1.0, %v5500_v30  ;;  %v5398_v62 = vpop.f32.mrf.mxu0  ;;  %v4227_v1 = vsel %vm3340_vm11, 1.0, %v5500_v30  ;;  %v5432_v2 = vpop.f32.mrf.mxu1 }
 0x19f   :  { %5016 = vst [vmem:[#allocation2 + $0x328] sm:$0xff] %v4842_v57   ;;  %v4839_v0 = vpack.c.bf16 %v4144_v61, %v4143_v59  ;;  %5031 = vst [vmem:[#allocation2 + $0x3a8] sm:$0xff] %v4890_v60   ;;  %v4887_v3 = vpack.c.bf16 %v4227_v1, %v4226_v63  ;;  %vm2918_vm12 = vcmp.eq.f32.partialorder %v5398_v62, 4.0  ;;  %vm3345_vm13 = vcmp.eq.f32.partialorder %v5432_v2, 4.0 }
 0x1a0   :  { %v2825_v4 = vpop.f32.mrf.mxu0  ;;  %v3252_v5 = vpop.f32.mrf.mxu1  ;;  %v4149_v8 = vsel %vm2918_vm12, 1.0, %v5500_v30  ;;  %v4232_v11 = vsel %vm3345_vm13, 1.0, %v5500_v30 }
 0x1a1   :  { %5015 = vst [vmem:[#allocation2 + $0x320] sm:$0xff] %v4839_v0   ;;  %5030 = vst [vmem:[#allocation2 + $0x3a0] sm:$0xff] %v4887_v3   ;;  %vm2916_vm14 = vcmp.eq.f32.partialorder %v2825_v4, 4.0  ;;  %vm3343_vm1 = vcmp.eq.f32.partialorder %v3252_v5, 4.0 }
 0x1a2   :  { %v5399_v6 = vpop.f32.mrf.mxu0  ;;  %v5433_v7 = vpop.f32.mrf.mxu1  ;;  %v4147_v22 = vsel %vm2916_vm14, 1.0, %v5500_v30  ;;  %v4230_v26 = vsel %vm3343_vm1, 1.0, %v5500_v30 }
 0x1a3   :  { %vm2919_vm15 = vcmp.eq.f32.partialorder %v5399_v6, 4.0  ;;  %vm3346_vm2 = vcmp.eq.f32.partialorder %v5433_v7, 4.0 }
 0x1a4   :  { %v4150_v17 = vsel %vm2919_vm15, 1.0, %v5500_v30  ;;  %v2828_v9 = vpop.f32.mrf.mxu0  ;;  %v4233_v10 = vsel %vm3346_vm2, 1.0, %v5500_v30  ;;  %v3255_v18 = vpop.f32.mrf.mxu1 }
 0x1a5   :  { %v4848_v12 = vpack.c.bf16 %v4150_v17, %v4149_v8  ;;  %vm2917_vm0 = vcmp.eq.f32.partialorder %v2828_v9, 4.0  ;;  %v4896_v23 = vpack.c.bf16 %v4233_v10, %v4232_v11  ;;  %vm3344_vm3 = vcmp.eq.f32.partialorder %v3255_v18, 4.0 }
 0x1a6   :  { %v4148_v24 = vsel %vm2917_vm0, 1.0, %v5500_v30  ;;  %v5402_v25 = vpop.f32.mrf.mxu0  ;;  %v4231_v28 = vsel %vm3344_vm3, 1.0, %v5500_v30  ;;  %v5436_v29 = vpop.f32.mrf.mxu1 }
 0x1a7   :  { %5018 = vst [vmem:[#allocation2 + $0x338] sm:$0xff] %v4848_v12   ;;  %v4845_v27 = vpack.c.bf16 %v4148_v24, %v4147_v22  ;;  %5033 = vst [vmem:[#allocation2 + $0x3b8] sm:$0xff] %v4896_v23   ;;  %v4893_v31 = vpack.c.bf16 %v4231_v28, %v4230_v26  ;;  %vm2922_vm4 = vcmp.eq.f32.partialorder %v5402_v25, 4.0  ;;  %vm3349_vm5 = vcmp.eq.f32.partialorder %v5436_v29, 4.0 }
 0x1a8   :  { %v2841_v32 = vpop.f32.mrf.mxu0  ;;  %v3268_v33 = vpop.f32.mrf.mxu1  ;;  %v4153_v36 = vsel %vm2922_vm4, 1.0, %v5500_v30  ;;  %v4236_v37 = vsel %vm3349_vm5, 1.0, %v5500_v30 }
 0x1a9   :  { %5017 = vst [vmem:[#allocation2 + $0x330] sm:$0xff] %v4845_v27   ;;  %5032 = vst [vmem:[#allocation2 + $0x3b0] sm:$0xff] %v4893_v31   ;;  %vm2920_vm6 = vcmp.eq.f32.partialorder %v2841_v32, 4.0  ;;  %vm3347_vm8 = vcmp.eq.f32.partialorder %v3268_v33, 4.0 }
 0x1aa   :  { %v5403_v34 = vpop.f32.mrf.mxu0  ;;  %v5437_v35 = vpop.f32.mrf.mxu1  ;;  %v4151_v40 = vsel %vm2920_vm6, 1.0, %v5500_v30  ;;  %v4234_v43 = vsel %vm3347_vm8, 1.0, %v5500_v30 }
 0x1ab   :  { %vm2923_vm7 = vcmp.eq.f32.partialorder %v5403_v34, 4.0  ;;  %vm3350_vm9 = vcmp.eq.f32.partialorder %v5437_v35, 4.0 }
 0x1ac   :  { %v4154_v19 = vsel %vm2923_vm7, 1.0, %v5500_v30  ;;  %v2844_v13 = vpop.f32.mrf.mxu0  ;;  %v4237_v39 = vsel %vm3350_vm9, 1.0, %v5500_v30  ;;  %v3271_v20 = vpop.f32.mrf.mxu1 }
 0x1ad   :  { %v4854_v38 = vpack.c.bf16 %v4154_v19, %v4153_v36  ;;  %vm2921_vm10 = vcmp.eq.f32.partialorder %v2844_v13, 4.0  ;;  %v4902_v14 = vpack.c.bf16 %v4237_v39, %v4236_v37  ;;  %vm3348_vm11 = vcmp.eq.f32.partialorder %v3271_v20, 4.0 }
 0x1ae   :  { %v4152_v41 = vsel %vm2921_vm10, 1.0, %v5500_v30  ;;  %v5406_v42 = vpop.f32.mrf.mxu0  ;;  %v4235_v45 = vsel %vm3348_vm11, 1.0, %v5500_v30  ;;  %v5440_v46 = vpop.f32.mrf.mxu1 }
 0x1af   :  { %5020 = vst [vmem:[#allocation2 + $0x348] sm:$0xff] %v4854_v38   ;;  %v4851_v44 = vpack.c.bf16 %v4152_v41, %v4151_v40  ;;  %5035 = vst [vmem:[#allocation2 + $0x3c8] sm:$0xff] %v4902_v14   ;;  %v4899_v47 = vpack.c.bf16 %v4235_v45, %v4234_v43  ;;  %vm2926_vm12 = vcmp.eq.f32.partialorder %v5406_v42, 4.0  ;;  %vm3353_vm13 = vcmp.eq.f32.partialorder %v5440_v46, 4.0 }
 0x1b0   :  { %v2857_v48 = vpop.f32.mrf.mxu0  ;;  %v3284_v49 = vpop.f32.mrf.mxu1  ;;  %v4157_v52 = vsel %vm2926_vm12, 1.0, %v5500_v30  ;;  %v4240_v15 = vsel %vm3353_vm13, 1.0, %v5500_v30 }
 0x1b1   :  { %5019 = vst [vmem:[#allocation2 + $0x340] sm:$0xff] %v4851_v44   ;;  %5034 = vst [vmem:[#allocation2 + $0x3c0] sm:$0xff] %v4899_v47   ;;  %vm2924_vm14 = vcmp.eq.f32.partialorder %v2857_v48, 4.0  ;;  %vm3351_vm1 = vcmp.eq.f32.partialorder %v3284_v49, 4.0 }
 0x1b2   :  { %v5407_v50 = vpop.f32.mrf.mxu0  ;;  %v5441_v51 = vpop.f32.mrf.mxu1  ;;  %v4155_v57 = vsel %vm2924_vm14, 1.0, %v5500_v30  ;;  %v4238_v60 = vsel %vm3351_vm1, 1.0, %v5500_v30 }
 0x1b3   :  { %vm2927_vm15 = vcmp.eq.f32.partialorder %v5407_v50, 4.0  ;;  %vm3354_vm2 = vcmp.eq.f32.partialorder %v5441_v51, 4.0 }
 0x1b4   :  { %v4158_v53 = vsel %vm2927_vm15, 1.0, %v5500_v30  ;;  %v2860_v54 = vpop.f32.mrf.mxu0  ;;  %v4241_v55 = vsel %vm3354_vm2, 1.0, %v5500_v30  ;;  %v3287_v56 = vpop.f32.mrf.mxu1 }
 0x1b5   :  { %v4860_v21 = vpack.c.bf16 %v4158_v53, %v4157_v52  ;;  %vm2925_vm0 = vcmp.eq.f32.partialorder %v2860_v54, 4.0  ;;  %v4908_v58 = vpack.c.bf16 %v4241_v55, %v4240_v15  ;;  %vm3352_vm3 = vcmp.eq.f32.partialorder %v3287_v56, 4.0 }
 0x1b6   :  { %v4156_v16 = vsel %vm2925_vm0, 1.0, %v5500_v30  ;;  %v5410_v59 = vpop.f32.mrf.mxu0  ;;  %v4239_v62 = vsel %vm3352_vm3, 1.0, %v5500_v30  ;;  %v5444_v63 = vpop.f32.mrf.mxu1 }
 0x1b7   :  { %5022 = vst [vmem:[#allocation2 + $0x358] sm:$0xff] %v4860_v21   ;;  %v4857_v61 = vpack.c.bf16 %v4156_v16, %v4155_v57  ;;  %5037 = vst [vmem:[#allocation2 + $0x3d8] sm:$0xff] %v4908_v58   ;;  %v4905_v0 = vpack.c.bf16 %v4239_v62, %v4238_v60  ;;  %vm2930_vm4 = vcmp.eq.f32.partialorder %v5410_v59, 4.0  ;;  %vm3357_vm5 = vcmp.eq.f32.partialorder %v5444_v63, 4.0 }
 0x1b8   :  { %v2873_v1 = vpop.f32.mrf.mxu0  ;;  %v3300_v2 = vpop.f32.mrf.mxu1  ;;  %v4161_v5 = vsel %vm2930_vm4, 1.0, %v5500_v30  ;;  %v4244_v8 = vsel %vm3357_vm5, 1.0, %v5500_v30 }
 0x1b9   :  { %5021 = vst [vmem:[#allocation2 + $0x350] sm:$0xff] %v4857_v61   ;;  %5036 = vst [vmem:[#allocation2 + $0x3d0] sm:$0xff] %v4905_v0   ;;  %vm2928_vm6 = vcmp.eq.f32.partialorder %v2873_v1, 4.0  ;;  %vm3355_vm8 = vcmp.eq.f32.partialorder %v3300_v2, 4.0 }
 0x1ba   :  { %v5411_v3 = vpop.f32.mrf.mxu0  ;;  %v5445_v4 = vpop.f32.mrf.mxu1  ;;  %v4159_v12 = vsel %vm2928_vm6, 1.0, %v5500_v30  ;;  %v4242_v23 = vsel %vm3355_vm8, 1.0, %v5500_v30 }
 0x1bb   :  { %vm2931_vm7 = vcmp.eq.f32.partialorder %v5411_v3, 4.0  ;;  %vm3358_vm9 = vcmp.eq.f32.partialorder %v5445_v4, 4.0 }
 0x1bc   :  { %v4162_v6 = vsel %vm2931_vm7, 1.0, %v5500_v30  ;;  %v2876_v7 = vpop.f32.mrf.mxu0  ;;  %v4245_v9 = vsel %vm3358_vm9, 1.0, %v5500_v30  ;;  %v3303_v11 = vpop.f32.mrf.mxu1 }
 0x1bd   :  { %v4866_v17 = vpack.c.bf16 %v4162_v6, %v4161_v5  ;;  %vm2929_vm10 = vcmp.eq.f32.partialorder %v2876_v7, 4.0  ;;  %v4914_v10 = vpack.c.bf16 %v4245_v9, %v4244_v8  ;;  %vm3356_vm11 = vcmp.eq.f32.partialorder %v3303_v11, 4.0 }
 0x1be   :  { %v4160_v18 = vsel %vm2929_vm10, 1.0, %v5500_v30  ;;  %v5414_v22 = vpop.f32.mrf.mxu0  ;;  %v4243_v25 = vsel %vm3356_vm11, 1.0, %v5500_v30  ;;  %v5448_v26 = vpop.f32.mrf.mxu1 }
 0x1bf   :  { %5024 = vst [vmem:[#allocation2 + $0x368] sm:$0xff] %v4866_v17   ;;  %v4863_v24 = vpack.c.bf16 %v4160_v18, %v4159_v12  ;;  %5039 = vst [vmem:[#allocation2 + $0x3e8] sm:$0xff] %v4914_v10   ;;  %v4911_v27 = vpack.c.bf16 %v4243_v25, %v4242_v23  ;;  %vm2934_vm12 = vcmp.eq.f32.partialorder %v5414_v22, 4.0  ;;  %vm3361_vm13 = vcmp.eq.f32.partialorder %v5448_v26, 4.0 }
 0x1c0   :  { %v2889_v28 = vpop.f32.mrf.mxu0  ;;  %v3316_v29 = vpop.f32.mrf.mxu1  ;;  %v4165_v33 = vsel %vm2934_vm12, 1.0, %v5500_v30  ;;  %v4248_v36 = vsel %vm3361_vm13, 1.0, %v5500_v30 }
 0x1c1   :  { %5023 = vst [vmem:[#allocation2 + $0x360] sm:$0xff] %v4863_v24   ;;  %5038 = vst [vmem:[#allocation2 + $0x3e0] sm:$0xff] %v4911_v27   ;;  %vm2932_vm14 = vcmp.eq.f32.partialorder %v2889_v28, 4.0  ;;  %vm3359_vm1 = vcmp.eq.f32.partialorder %v3316_v29, 4.0 }
 0x1c2   :  { %v5415_v31 = vpop.f32.mrf.mxu0  ;;  %v5449_v32 = vpop.f32.mrf.mxu1  ;;  %v4163_v38 = vsel %vm2932_vm14, 1.0, %v5500_v30  ;;  %v4246_v40 = vsel %vm3359_vm1, 1.0, %v5500_v30 }
 0x1c3   :  { %vm2935_vm15 = vcmp.eq.f32.partialorder %v5415_v31, 4.0  ;;  %vm3362_vm2 = vcmp.eq.f32.partialorder %v5449_v32, 4.0 }
 0x1c4   :  { %v4166_v34 = vsel %vm2935_vm15, 1.0, %v5500_v30  ;;  %v2892_v35 = vpop.f32.mrf.mxu0  ;;  %v4249_v13 = vsel %vm3362_vm2, 1.0, %v5500_v30  ;;  %v3319_v37 = vpop.f32.mrf.mxu1 }
 0x1c5   :  { %v4872_v19 = vpack.c.bf16 %v4166_v34, %v4165_v33  ;;  %vm2933_vm0 = vcmp.eq.f32.partialorder %v2892_v35, 4.0  ;;  %v4920_v39 = vpack.c.bf16 %v4249_v13, %v4248_v36  ;;  %vm3360_vm3 = vcmp.eq.f32.partialorder %v3319_v37, 4.0 }
 0x1c6   :  { %v4164_v20 = vsel %vm2933_vm0, 1.0, %v5500_v30  ;;  %v4247_v41 = vsel %vm3360_vm3, 1.0, %v5500_v30 }
 0x1c7   :  { %5026 = vst [vmem:[#allocation2 + $0x378] sm:$0xff] %v4872_v19   ;;  %v4869_v14 = vpack.c.bf16 %v4164_v20, %v4163_v38  ;;  %5041 = vst [vmem:[#allocation2 + $0x3f8] sm:$0xff] %v4920_v39   ;;  %v4917_v42 = vpack.c.bf16 %v4247_v41, %v4246_v40 }
 0x1c9   :  { %5025 = vst [vmem:[#allocation2 + $0x370] sm:$0xff] %v4869_v14   ;;  %5040 = vst [vmem:[#allocation2 + $0x3f0] sm:$0xff] %v4917_v42  }
 0x1ca   :  { %5489 = shalt.err (!%p5486_p4)
}
 0x1cb   :  { %s5502_s30 = smov 64   ;;  %s5503_s3 = smov 4  }
 0x1cc   :  { %3599 = dma.vmem_to_hbm [thread:$0]  %s3594_s28, 16384, %s6140_s2, [#allocation3], %s5502_s30, %s5502_s30, %s5503_s3  }
 0x1cd   :  { %5498 = dma.done.wait [#allocation3], 16384  }
 0x1ce   :  { %5499 = vsyncadd [#allocation3], 4294950912 }
 0x1cf   :  { %3603 = vsyncpa [#allocation3], 1 }

</bundles_post_ra>
